<compile_context>
chip_gen: v7x
topology: tpu7x:2x2x1
jax: 0.10.0
libtpu: 0.0.40
codegen_flags: <defaults>
</compile_context>

<pallas_src>
import functools
import math

import jax
import jax.numpy as jnp
from jax.experimental import pallas as pl
from jax.experimental.pallas import tpu as pltpu


# ----------------------------------------------------------------- helpers

def _pick_tile(dim, preferred, multiple=8):
    """Largest divisor of `dim` that is <= `preferred` and a multiple of
    `multiple`; full dim if nothing qualifies (full dims are always legal)."""
    if dim <= preferred:
        return dim
    for t in range(preferred, 0, -1):
        if dim % t == 0 and t % multiple == 0:
            return t
    return dim


def _vmem_limit_bytes():
    """Scoped-VMEM cap with headroom: ~48 MiB on v7x, ~96 MiB on v5e/v6e."""
    try:
        cap = int(pltpu.get_tpu_info().vmem_capacity_bytes)
    except Exception:
        cap = 64 * 1024 * 1024
    return max(32 * 1024 * 1024, min(cap - 16 * 1024 * 1024, 96 * 1024 * 1024))


def _layernorm_f32(x, g, b, eps):
    mean = jnp.mean(x, axis=-1, keepdims=True)
    var = jnp.mean(jnp.square(x - mean), axis=-1, keepdims=True)
    return (x - mean) * jax.lax.rsqrt(var + eps) * g + b


def _gelu_new(x):
    # GPT2 "gelu_new" (tanh approximation), kept in f32.
    c = 0.7978845608028654  # sqrt(2/pi)
    return 0.5 * x * (1.0 + jnp.tanh(c * (x + 0.044715 * x * x * x)))


def _compiler_params(semantics, vmem_limit):
    return pltpu.CompilerParams(
        dimension_semantics=semantics,
        vmem_limit_bytes=vmem_limit,
    )


# ----------------------------------------------------------------- kernels

def _ln_qkv_kernel(x_ref, g_ref, b_ref, w_ref, bias_ref, cond_ref, o_ref,
                   h_ref, *, eps):
    """LayerNorm1 (computed once, cached in VMEM) + c_attn matmul for one of
    {q,k,v} + (gate*cond) epilogue. Output layout is (B, 3, S, D)."""
    n = pl.program_id(2)

    @pl.when(n == 0)
    def _():
        x = x_ref[0]                                         # (ts, D) f32
        h = _layernorm_f32(x, g_ref[...], b_ref[...], eps)   # f32 stats
        h_ref[...] = h.astype(h_ref.dtype)                   # cache LN once

    y = jnp.dot(h_ref[...], w_ref[0],
                preferred_element_type=jnp.float32)          # bf16 MXU, f32 acc
    y = y + bias_ref[0] + cond_ref[0, 0]                     # gate pre-folded
    o_ref[0, 0] = y.astype(o_ref.dtype)


def _attn_proj_kernel(q_ref, k_ref, v_ref, x_ref, pw_ref, pb_ref,
                      gam_ref, bet_ref, o_ref, m_ref, l_ref, acc_ref, *,
                      num_heads, head_dim, block_q, block_kv, scale):
    """Causal flash attention with per-head online softmax; the finalize
    branch applies c_proj + residual + FiLM1 so the context never hits HBM."""
    qi = pl.program_id(1)
    ki = pl.program_id(2)
    nk = pl.num_programs(2)

    @pl.when(ki == 0)
    def _():
        m_ref[...] = jnp.full_like(m_ref, -jnp.inf)
        l_ref[...] = jnp.zeros_like(l_ref)
        acc_ref[...] = jnp.zeros_like(acc_ref)

    # Compute only tiles that touch the lower triangle; fully masked tiles are
    # skipped here and (via the clamped kv index_map) never DMA'd either.
    @pl.when(ki * block_kv < (qi + 1) * block_q)
    def _():
        q_blk = q_ref[0, 0]                                  # (bq, D) bf16
        k_blk = k_ref[0, 0]                                  # (bk, D) bf16
        v_blk = v_ref[0, 0]                                  # (bk, D) bf16
        q_pos = qi * block_q + jax.lax.broadcasted_iota(
            jnp.int32, (block_q, block_kv), 0)
        k_pos = ki * block_kv + jax.lax.broadcasted_iota(
            jnp.int32, (block_q, block_kv), 1)
        causal = k_pos <= q_pos
        neg = jnp.finfo(jnp.float32).min

        for h in range(num_heads):
            lo = h * head_dim
            q = q_blk[:, lo:lo + head_dim]
            k = k_blk[:, lo:lo + head_dim]
            v = v_blk[:, lo:lo + head_dim]

            s = jnp.dot(q, k.T, preferred_element_type=jnp.float32) * scale
            s = jnp.where(causal, s, neg)

            m_prev = m_ref[h]                                # (bq, 1) f32
            m_new = jnp.maximum(m_prev, jnp.max(s, axis=-1, keepdims=True))
            alpha = jnp.exp(m_prev - m_new)
            p = jnp.exp(s - m_new)
            l_ref[h] = alpha * l_ref[h] + jnp.sum(p, axis=-1, keepdims=True)
            acc_ref[:, lo:lo + head_dim] = (
                alpha * acc_ref[:, lo:lo + head_dim]
                + jnp.dot(p.astype(v.dtype), v,
                          preferred_element_type=jnp.float32))
            m_ref[h] = m_new

    @pl.when(ki == nk - 1)
    def _():
        # One full-width normalize (lane-dense), then c_proj + residual + FiLM1.
        inv = jnp.concatenate(
            [jnp.broadcast_to(pl.reciprocal(l_ref[h], approx=True),
                              (block_q, head_dim))
             for h in range(num_heads)], axis=-1)             # (bq, D)
        ctx = acc_ref[...] * inv
        y = jnp.dot(ctx.astype(pw_ref.dtype), pw_ref[...],
                    preferred_element_type=jnp.float32)
        y = y + pb_ref[...] + x_ref[0]                        # residual (f32)
        o_ref[0] = (gam_ref[0] * y + bet_ref[0]).astype(o_ref.dtype)


def _mlp_kernel(h_ref, g2_ref, b2_ref, fcw_ref, fcb_ref, pw_ref, pb_ref,
                gam_ref, bet_ref, o_ref, acc_ref, h2_ref, *, eps):
    """Fused ln_2 + c_fc + gelu_new + c_proj2 + residual + FiLM2.
    The gelu activation never leaves VMEM; when tk_in == inner the reduction
    axis has a single step and the weights are DMA'd exactly once."""
    k = pl.program_id(2)
    nk = pl.num_programs(2)

    @pl.when(k == 0)
    def _():
        acc_ref[...] = jnp.zeros_like(acc_ref)
        x = h_ref[0]                                          # (ts, D) f32
        h2 = _layernorm_f32(x, g2_ref[...], b2_ref[...], eps)
        h2_ref[...] = h2.astype(h2_ref.dtype)                 # cache LN (bf16)

    u = jnp.dot(h2_ref[...], fcw_ref[...], preferred_element_type=jnp.float32)
    u = _gelu_new(u + fcb_ref[...])                           # f32 epilogue
    acc_ref[...] += jnp.dot(u.astype(pw_ref.dtype), pw_ref[...],
                            preferred_element_type=jnp.float32)

    @pl.when(k == nk - 1)
    def _():
        ff = acc_ref[...] + pb_ref[...]
        y = h_ref[0] + ff                                     # residual (f32)
        o_ref[0] = (gam_ref[0] * y + bet_ref[0]).astype(o_ref.dtype)


# ------------------------------------------------------------- block wrapper

def gpt2_condition_block(x, cond, gate, f1_gamma, f1_beta, f2_gamma, f2_beta,
                         params, *, num_heads, eps):
    B, S, D = x.shape
    hd = D // num_heads
    inner = params["fc_w"].shape[1]
    f32, bf16 = jnp.float32, jnp.bfloat16
    vmem_limit = _vmem_limit_bytes()

    # MXU operands in bf16; LN / bias / FiLM / accumulation stay f32.
    # c_attn is reshaped to (3, D, D) so every block's lane dim is the full D.
    c_attn_w = params["c_attn_w"].reshape(D, 3, D).transpose(1, 0, 2).astype(bf16)
    c_attn_b = params["c_attn_b"].reshape(3, 1, D).astype(f32)
    c_proj_w = params["c_proj_w"].astype(bf16)
    fc_w = params["fc_w"].astype(bf16)
    fcproj_w = params["fcproj_w"].astype(bf16)

    ln1_g = params["ln1_g"].reshape(1, D).astype(f32)
    ln1_b = params["ln1_b"].reshape(1, D).astype(f32)
    ln2_g = params["ln2_g"].reshape(1, D).astype(f32)
    ln2_b = params["ln2_b"].reshape(1, D).astype(f32)
    c_proj_b = params["c_proj_b"].reshape(1, D).astype(f32)
    fc_b = params["fc_b"].reshape(1, inner).astype(f32)
    fcproj_b = params["fcproj_b"].reshape(1, D).astype(f32)

    # Tiny conditioning projection: plain XLA (an MXU tile would be ~all
    # padding); the attention gate is folded in here, then reshaped to
    # (B, 3, 1, D) so each q/k/v grid step grabs a lane-dense (1, D) row.
    cond_qkv = jnp.dot(cond.reshape(B, D).astype(f32),
                       params["c_cond_w"].astype(f32)) + params["c_cond_b"]
    cond_gated = (gate.reshape(B, 1) * cond_qkv).reshape(B, 3, 1, D).astype(f32)

    f1_gamma = f1_gamma.reshape(B, 1, D).astype(f32)
    f1_beta = f1_beta.reshape(B, 1, D).astype(f32)
    f2_gamma = f2_gamma.reshape(B, 1, D).astype(f32)
    f2_beta = f2_beta.reshape(B, 1, D).astype(f32)

    # Tile sizes: largest divisor <= preferred (multiple of 8 for sublane
    # dims, 128 for lane dims) -- no full-dim fallback unless nothing fits.
    ts = _pick_tile(S, 512)          # row tile for the linears
    bq = _pick_tile(S, 256)          # attention q tile
    bk = bq                          # causal skip / finalize assume bq == bk
    assert bq == bk

    # MLP reduction tile: collapse to the full inner dim (weights resident in
    # VMEM, DMA'd once) when the weight footprint fits the budget.
    mlp_weight_bytes = 2 * D * inner * 2          # fc_w + fcproj_w in bf16
    if 2 * mlp_weight_bytes <= vmem_limit // 2:   # 2x for double buffers
        tk_in = inner
    else:
        tk_in = _pick_tile(inner, 1024, multiple=128)

    # ---- 1) ln_1 + c_attn + gated condition add --> qkv (B, 3, S, D) --------
    qkv = pl.pallas_call(
        functools.partial(_ln_qkv_kernel, eps=eps),
        out_shape=jax.ShapeDtypeStruct((B, 3, S, D), bf16),
        grid=(B, S // ts, 3),
        in_specs=[
            pl.BlockSpec((1, ts, D), lambda b, s, n: (b, s, 0)),
            pl.BlockSpec((1, D), lambda b, s, n: (0, 0)),
            pl.BlockSpec((1, D), lambda b, s, n: (0, 0)),
            pl.BlockSpec((1, D, D), lambda b, s, n: (n, 0, 0)),
            pl.BlockSpec((1, 1, D), lambda b, s, n: (n, 0, 0)),
            pl.BlockSpec((1, 1, 1, D), lambda b, s, n: (b, n, 0, 0)),
        ],
        out_specs=pl.BlockSpec((1, 1, ts, D), lambda b, s, n: (b, n, s, 0)),
        scratch_shapes=[pltpu.VMEM((ts, D), bf16)],   # cached LayerNorm(x)
        compiler_params=_compiler_params(
            ("parallel", "parallel", "arbitrary"), vmem_limit),
    )(x, ln1_g, ln1_b, c_attn_w, c_attn_b, cond_gated)

    # ---- 2) causal flash attention + c_proj + residual + FiLM1 --------------
    nq, nk = S // bq, S // bk

    def _q_map(b, qi, ki):
        return (b, 0, qi, 0)

    def _kv_map(plane):
        # Clamp dead causal tiles to the last valid block index so no DMA is
        # issued for fully masked (qi, ki) steps.
        def m(b, qi, ki):
            return (b, plane, jnp.minimum(ki, qi), 0)
        return m

    h1 = pl.pallas_call(
        functools.partial(_attn_proj_kernel, num_heads=num_heads, head_dim=hd,
                          block_q=bq, block_kv=bk, scale=1.0 / math.sqrt(hd)),
        out_shape=jax.ShapeDtypeStruct((B, S, D), f32),
        grid=(B, nq, nk),
        in_specs=[
            pl.BlockSpec((1, 1, bq, D), _q_map),          # Q
            pl.BlockSpec((1, 1, bk, D), _kv_map(1)),      # K
            pl.BlockSpec((1, 1, bk, D), _kv_map(2)),      # V
            pl.BlockSpec((1, bq, D), lambda b, qi, ki: (b, qi, 0)),   # residual x
            pl.BlockSpec((D, D), lambda b, qi, ki: (0, 0)),           # c_proj_w
            pl.BlockSpec((1, D), lambda b, qi, ki: (0, 0)),           # c_proj_b
            pl.BlockSpec((1, 1, D), lambda b, qi, ki: (b, 0, 0)),     # f1_gamma
            pl.BlockSpec((1, 1, D), lambda b, qi, ki: (b, 0, 0)),     # f1_beta
        ],
        out_specs=pl.BlockSpec((1, bq, D), lambda b, qi, ki: (b, qi, 0)),
        scratch_shapes=[
            pltpu.VMEM((num_heads, bq, 1), f32),   # running max (per head)
            pltpu.VMEM((num_heads, bq, 1), f32),   # running denom (per head)
            pltpu.VMEM((bq, D), f32),              # context accumulator
        ],
        compiler_params=_compiler_params(
            ("parallel", "parallel", "arbitrary"), vmem_limit),
    )(qkv, qkv, qkv, x, c_proj_w, c_proj_b, f1_gamma, f1_beta)

    # ---- 3) fused MLP: ln_2 + c_fc + gelu + c_proj2 + residual + FiLM2 -------
    out = pl.pallas_call(
        functools.partial(_mlp_kernel, eps=eps),
        out_shape=jax.ShapeDtypeStruct((B, S, D), f32),
        grid=(B, S // ts, inner // tk_in),
        in_specs=[
            pl.BlockSpec((1, ts, D), lambda b, s, k: (b, s, 0)),
            pl.BlockSpec((1, D), lambda b, s, k: (0, 0)),
            pl.BlockSpec((1, D), lambda b, s, k: (0, 0)),
            pl.BlockSpec((D, tk_in), lambda b, s, k: (0, k)),
            pl.BlockSpec((1, tk_in), lambda b, s, k: (0, k)),
            pl.BlockSpec((tk_in, D), lambda b, s, k: (k, 0)),
            pl.BlockSpec((1, D), lambda b, s, k: (0, 0)),
            pl.BlockSpec((1, 1, D), lambda b, s, k: (b, 0, 0)),
            pl.BlockSpec((1, 1, D), lambda b, s, k: (b, 0, 0)),
        ],
        out_specs=pl.BlockSpec((1, ts, D), lambda b, s, k: (b, s, 0)),
        scratch_shapes=[pltpu.VMEM((ts, D), f32), pltpu.VMEM((ts, D), bf16)],
        compiler_params=_compiler_params(
            ("parallel", "parallel", "arbitrary"), vmem_limit),
    )(h1, ln2_g, ln2_b, fc_w, fc_b, fcproj_w, fcproj_b, f2_gamma, f2_beta)

    return out


# --------------------------------------------------------- pure-JAX reference

def _reference(x, cond, gate, f1g, f1b, f2g, f2b, p, *, num_heads, eps):
    B, S, D = x.shape
    hd = D // num_heads

    def ln(t, g, b):
        m = jnp.mean(t, axis=-1, keepdims=True)
        v = jnp.mean(jnp.square(t - m), axis=-1, keepdims=True)
        return (t - m) * jax.lax.rsqrt(v + eps) * g + b

    h = ln(x, p["ln1_g"], p["ln1_b"])
    qkv = h @ p["c_attn_w"] + p["c_attn_b"]
    cond_qkv = cond @ p["c_cond_w"] + p["c_cond_b"]
    qkv = qkv + gate * cond_qkv
    q, k, v = jnp.split(qkv, 3, axis=-1)

    def heads(t):
        return t.reshape(B, S, num_heads, hd).transpose(0, 2, 1, 3)

    q, k, v = heads(q), heads(k), heads(v)
    s = jnp.einsum("bhqd,bhkd->bhqk", q, k) / math.sqrt(hd)
    mask = jnp.tril(jnp.ones((S, S), bool))
    s = jnp.where(mask, s, jnp.finfo(jnp.float32).min)
    w = jax.nn.softmax(s, axis=-1)
    ctx = jnp.einsum("bhqk,bhkd->bhqd", w, v).transpose(0, 2, 1, 3).reshape(B, S, D)
    attn = ctx @ p["c_proj_w"] + p["c_proj_b"]
    h1 = f1g * (attn + x) + f1b
    h2 = ln(h1, p["ln2_g"], p["ln2_b"])
    u = h2 @ p["fc_w"] + p["fc_b"]
    u = 0.5 * u * (1.0 + jnp.tanh(0.7978845608028654 * (u + 0.044715 * u ** 3)))
    ff = u @ p["fcproj_w"] + p["fcproj_b"]
    return f2g * (h1 + ff) + f2b


# ------------------------------------------------------------------- driver

def init_params(key, hidden, inner):
    ks = jax.random.split(key, 5)
    std = 0.02
    return {
        "ln1_g": jnp.ones((hidden,), jnp.float32),
        "ln1_b": jnp.zeros((hidden,), jnp.float32),
        "c_attn_w": std * jax.random.normal(ks[0], (hidden, 3 * hidden), jnp.float32),
        "c_attn_b": jnp.zeros((3 * hidden,), jnp.float32),
        "c_cond_w": std * jax.random.normal(ks[1], (hidden, 3 * hidden), jnp.float32),
        "c_cond_b": jnp.zeros((3 * hidden,), jnp.float32),
        "c_proj_w": std * jax.random.normal(ks[2], (hidden, hidden), jnp.float32),
        "c_proj_b": jnp.zeros((hidden,), jnp.float32),
        "ln2_g": jnp.ones((hidden,), jnp.float32),
        "ln2_b": jnp.zeros((hidden,), jnp.float32),
        "fc_w": std * jax.random.normal(ks[3], (hidden, inner), jnp.float32),
        "fc_b": jnp.zeros((inner,), jnp.float32),
        "fcproj_w": std * jax.random.normal(ks[4], (inner, hidden), jnp.float32),
        "fcproj_b": jnp.zeros((hidden,), jnp.float32),
    }


if __name__ == "__main__":
    # TODO(synk): dropout, KV-cache (layer_past/use_cache), cross-attention,
    # attention_mask/head_mask and output_attentions paths are not implemented
    # (eval-mode forward with all of them disabled, as in the default path).
    B, S, D = 2, 8, 32
    num_heads = 4
    inner = 4 * D
    eps = 1e-5

    key = jax.random.PRNGKey(0)
    k_x, k_c, k_g, k_f1g, k_f1b, k_f2g, k_f2b, k_p = jax.random.split(key, 8)

    x = jax.random.normal(k_x, (B, S, D), jnp.float32)
    cond = jax.random.normal(k_c, (B, 1, D), jnp.float32)
    gate = jax.random.uniform(k_g, (B, 1, 1), jnp.float32)
    film1_gamma = 1.0 + 0.1 * jax.random.normal(k_f1g, (B, 1, D), jnp.float32)
    film1_beta = 0.1 * jax.random.normal(k_f1b, (B, 1, D), jnp.float32)
    film2_gamma = 1.0 + 0.1 * jax.random.normal(k_f2g, (B, 1, D), jnp.float32)
    film2_beta = 0.1 * jax.random.normal(k_f2b, (B, 1, D), jnp.float32)

    params = init_params(k_p, D, inner)

    block_fn = jax.jit(functools.partial(
        gpt2_condition_block, num_heads=num_heads, eps=eps))
    out = block_fn(x, cond, gate, film1_gamma, film1_beta,
                   film2_gamma, film2_beta, params)
    jax.block_until_ready(out)

    assert out.shape == (B, S, D)
    assert bool(jnp.all(jnp.isfinite(out)))

    ref = _reference(x, cond, gate, film1_gamma, film1_beta,
                     film2_gamma, film2_beta, params,
                     num_heads=num_heads, eps=eps)
    # bf16 MXU operands + approx reciprocal -> loose tolerance vs f32 reference.
    assert bool(jnp.allclose(out, ref, atol=5e-2, rtol=5e-2))

    print("KERNEL_OK")
</pallas_src>

<mosaic_0001>
module attributes {stable_mosaic.version = 11 : i64} {
  func.func @_ln_qkv_kernel(%arg0: i32, %arg1: i32, %arg2: i32, %arg3: memref<1x8x32xf32, #tpu.memory_space<vmem>>, %arg4: memref<1x32xf32, #tpu.memory_space<vmem>>, %arg5: memref<1x32xf32, #tpu.memory_space<vmem>>, %arg6: memref<1x32x32xbf16, #tpu.memory_space<vmem>>, %arg7: memref<1x1x32xf32, #tpu.memory_space<vmem>>, %arg8: memref<1x1x1x32xf32, #tpu.memory_space<vmem>>, %arg9: memref<1x1x8x32xbf16, #tpu.memory_space<vmem>>, %arg10: memref<8x32xbf16, #tpu.memory_space<vmem>>) attributes {dimension_semantics = [#tpu.dimension_semantics<parallel>, #tpu.dimension_semantics<parallel>, #tpu.dimension_semantics<arbitrary>], iteration_bounds = array<i64: 2, 1, 3>, scalar_prefetch = 0 : i64, scratch_operands = 1 : i64, tpu.core_type = #tpu.core_type<tc>, window_params = [{transform_indices = @transform_0, window_bounds = array<i64: 1, 8, 32>}, {pipeline_mode = #tpu.pipeline_mode<synchronous>, transform_indices = @transform_1, window_bounds = array<i64: 1, 32>}, {pipeline_mode = #tpu.pipeline_mode<synchronous>, transform_indices = @transform_2, window_bounds = array<i64: 1, 32>}, {transform_indices = @transform_3, window_bounds = array<i64: 1, 32, 32>}, {transform_indices = @transform_4, window_bounds = array<i64: 1, 1, 32>}, {transform_indices = @transform_5, window_bounds = array<i64: 1, 1, 1, 32>}, {transform_indices = @transform_6, window_bounds = array<i64: 1, 1, 8, 32>}]} {
    %c0_i32 = arith.constant 0 : i32
    %0 = arith.cmpi eq, %arg2, %c0_i32 : i32
    %1 = arith.extui %0 : i1 to i32
    %c0_i32_0 = arith.constant 0 : i32
    %2 = arith.cmpi ne, %1, %c0_i32_0 : i32
    scf.if %2 {
      %c0_16 = arith.constant 0 : index
      %c0_17 = arith.constant 0 : index
      %c0_18 = arith.constant 0 : index
      %19 = vector.load %arg3[%c0_16, %c0_17, %c0_18] : memref<1x8x32xf32, #tpu.memory_space<vmem>>, vector<1x8x32xf32>
      %20 = vector.shape_cast %19 : vector<1x8x32xf32> to vector<8x32xf32>
      %c0_19 = arith.constant 0 : index
      %c0_20 = arith.constant 0 : index
      %21 = vector.load %arg4[%c0_19, %c0_20] : memref<1x32xf32, #tpu.memory_space<vmem>>, vector<1x32xf32>
      %c0_21 = arith.constant 0 : index
      %c0_22 = arith.constant 0 : index
      %22 = vector.load %arg5[%c0_21, %c0_22] : memref<1x32xf32, #tpu.memory_space<vmem>>, vector<1x32xf32>
      %cst_23 = arith.constant dense<0.000000e+00> : vector<8xf32>
      %23 = vector.multi_reduction <add>, %20, %cst_23 [1] : vector<8x32xf32> to vector<8xf32>
      %24 = vector.shape_cast %23 : vector<8xf32> to vector<8x1xf32>
      %cst_24 = arith.constant 3.200000e+01 : f32
      %25 = vector.broadcast %cst_24 : f32 to vector<8x1xf32>
      %26 = arith.divf %24, %25 : vector<8x1xf32>
      %27 = vector.broadcast %26 : vector<8x1xf32> to vector<8x32xf32>
      %28 = arith.subf %20, %27 : vector<8x32xf32>
      %29 = arith.mulf %28, %28 : vector<8x32xf32>
      %cst_25 = arith.constant dense<0.000000e+00> : vector<8xf32>
      %30 = vector.multi_reduction <add>, %29, %cst_25 [1] : vector<8x32xf32> to vector<8xf32>
      %31 = vector.shape_cast %30 : vector<8xf32> to vector<8x1xf32>
      %cst_26 = arith.constant 3.200000e+01 : f32
      %32 = vector.broadcast %cst_26 : f32 to vector<8x1xf32>
      %33 = arith.divf %31, %32 : vector<8x1xf32>
      %34 = vector.broadcast %26 : vector<8x1xf32> to vector<8x32xf32>
      %35 = arith.subf %20, %34 : vector<8x32xf32>
      %cst_27 = arith.constant 9.99999974E-6 : f32
      %36 = vector.broadcast %cst_27 : f32 to vector<8x1xf32>
      %37 = arith.addf %33, %36 : vector<8x1xf32>
      %38 = math.rsqrt %37 : vector<8x1xf32>
      %39 = vector.broadcast %38 : vector<8x1xf32> to vector<8x32xf32>
      %40 = arith.mulf %35, %39 : vector<8x32xf32>
      %41 = vector.broadcast %21 : vector<1x32xf32> to vector<8x32xf32>
      %42 = arith.mulf %40, %41 : vector<8x32xf32>
      %43 = vector.broadcast %22 : vector<1x32xf32> to vector<8x32xf32>
      %44 = arith.addf %42, %43 : vector<8x32xf32>
      %45 = arith.truncf %44 : vector<8x32xf32> to vector<8x32xbf16>
      %c0_28 = arith.constant 0 : index
      %c0_29 = arith.constant 0 : index
      %46 = vector.load %arg10[%c0_28, %c0_29] : memref<8x32xbf16, #tpu.memory_space<vmem>>, vector<8x32xbf16>
      tpu.vector_store %arg10[%c0_28, %c0_29], %45 {strides = array<i32>} : memref<8x32xbf16, #tpu.memory_space<vmem>>, vector<8x32xbf16>,
    } else {
    }
    %c0 = arith.constant 0 : index
    %c0_1 = arith.constant 0 : index
    %3 = vector.load %arg10[%c0, %c0_1] : memref<8x32xbf16, #tpu.memory_space<vmem>>, vector<8x32xbf16>
    %c0_2 = arith.constant 0 : index
    %c0_3 = arith.constant 0 : index
    %c0_4 = arith.constant 0 : index
    %4 = vector.load %arg6[%c0_2, %c0_3, %c0_4] : memref<1x32x32xbf16, #tpu.memory_space<vmem>>, vector<1x32x32xbf16>
    %5 = vector.shape_cast %4 : vector<1x32x32xbf16> to vector<32x32xbf16>
    %cst = arith.constant dense<0.000000e+00> : vector<8x32xf32>
    %6 = tpu.matmul %3, %5, %cst {dimension_numbers = #tpu.dot_dimension_numbers<[1], [0], [0], [1], [0, 0, 1, 1], [], []>} : vector<8x32xbf16>, vector<32x32xbf16>, vector<8x32xf32> -> vector<8x32xf32>
    %c0_5 = arith.constant 0 : index
    %c0_6 = arith.constant 0 : index
    %c0_7 = arith.constant 0 : index
    %7 = vector.load %arg7[%c0_5, %c0_6, %c0_7] : memref<1x1x32xf32, #tpu.memory_space<vmem>>, vector<1x1x32xf32>
    %8 = vector.shape_cast %7 : vector<1x1x32xf32> to vector<1x32xf32>
    %9 = vector.broadcast %8 : vector<1x32xf32> to vector<8x32xf32>
    %10 = arith.addf %6, %9 : vector<8x32xf32>
    %c0_8 = arith.constant 0 : index
    %c0_9 = arith.constant 0 : index
    %c0_10 = arith.constant 0 : index
    %c0_11 = arith.constant 0 : index
    %11 = vector.load %arg8[%c0_8, %c0_9, %c0_10, %c0_11] : memref<1x1x1x32xf32, #tpu.memory_space<vmem>>, vector<1x1x1x32xf32>
    %12 = vector.shape_cast %11 : vector<1x1x1x32xf32> to vector<1x32xf32>
    %13 = vector.broadcast %12 : vector<1x32xf32> to vector<8x32xf32>
    %14 = arith.addf %10, %13 : vector<8x32xf32>
    %15 = arith.truncf %14 : vector<8x32xf32> to vector<8x32xbf16>
    %c0_12 = arith.constant 0 : index
    %c0_13 = arith.constant 0 : index
    %c0_14 = arith.constant 0 : index
    %c0_15 = arith.constant 0 : index
    %16 = vector.load %arg9[%c0_12, %c0_13, %c0_14, %c0_15] : memref<1x1x8x32xbf16, #tpu.memory_space<vmem>>, vector<1x1x8x32xbf16>
    %17 = vector.shape_cast %16 : vector<1x1x8x32xbf16> to vector<8x32xbf16>
    %18 = vector.shape_cast %15 : vector<8x32xbf16> to vector<1x1x8x32xbf16>
    tpu.vector_store %arg9[%c0_12, %c0_13, %c0_14, %c0_15], %18 {strides = array<i32>} : memref<1x1x8x32xbf16, #tpu.memory_space<vmem>>, vector<1x1x8x32xbf16>,
    return
  }
  func.func @transform_0(%arg0: i32, %arg1: i32, %arg2: i32) -> (i32, i32, i32) {
    %c0_i32 = arith.constant 0 : i32
    %c0_i32_0 = arith.constant 0 : i32
    return %arg0, %arg1, %c0_i32 : i32, i32, i32
  }
  func.func @transform_1(%arg0: i32, %arg1: i32, %arg2: i32) -> (i32, i32) {
    %c0_i32 = arith.constant 0 : i32
    %c0_i32_0 = arith.constant 0 : i32
    %c0_i32_1 = arith.constant 0 : i32
    return %c0_i32, %c0_i32_0 : i32, i32
  }
  func.func @transform_2(%arg0: i32, %arg1: i32, %arg2: i32) -> (i32, i32) {
    %c0_i32 = arith.constant 0 : i32
    %c0_i32_0 = arith.constant 0 : i32
    %c0_i32_1 = arith.constant 0 : i32
    return %c0_i32, %c0_i32_0 : i32, i32
  }
  func.func @transform_3(%arg0: i32, %arg1: i32, %arg2: i32) -> (i32, i32, i32) {
    %c0_i32 = arith.constant 0 : i32
    %c0_i32_0 = arith.constant 0 : i32
    %c0_i32_1 = arith.constant 0 : i32
    return %arg2, %c0_i32, %c0_i32_0 : i32, i32, i32
  }
  func.func @transform_4(%arg0: i32, %arg1: i32, %arg2: i32) -> (i32, i32, i32) {
    %c0_i32 = arith.constant 0 : i32
    %c0_i32_0 = arith.constant 0 : i32
    %c0_i32_1 = arith.constant 0 : i32
    return %arg2, %c0_i32, %c0_i32_0 : i32, i32, i32
  }
  func.func @transform_5(%arg0: i32, %arg1: i32, %arg2: i32) -> (i32, i32, i32, i32) {
    %c0_i32 = arith.constant 0 : i32
    %c0_i32_0 = arith.constant 0 : i32
    %c0_i32_1 = arith.constant 0 : i32
    return %arg0, %arg2, %c0_i32, %c0_i32_0 : i32, i32, i32, i32
  }
  func.func @transform_6(%arg0: i32, %arg1: i32, %arg2: i32) -> (i32, i32, i32, i32) {
    %c0_i32 = arith.constant 0 : i32
    %c0_i32_0 = arith.constant 0 : i32
    return %arg0, %arg2, %arg1, %c0_i32 : i32, i32, i32, i32
  }
}

module attributes {stable_mosaic.version = 11 : i64} {
  func.func @_attn_proj_kernel(%arg0: i32, %arg1: i32, %arg2: i32, %arg3: memref<1x1x8x32xbf16, #tpu.memory_space<vmem>>, %arg4: memref<1x1x8x32xbf16, #tpu.memory_space<vmem>>, %arg5: memref<1x1x8x32xbf16, #tpu.memory_space<vmem>>, %arg6: memref<1x8x32xf32, #tpu.memory_space<vmem>>, %arg7: memref<32x32xbf16, #tpu.memory_space<vmem>>, %arg8: memref<1x32xf32, #tpu.memory_space<vmem>>, %arg9: memref<1x1x32xf32, #tpu.memory_space<vmem>>, %arg10: memref<1x1x32xf32, #tpu.memory_space<vmem>>, %arg11: memref<1x8x32xf32, #tpu.memory_space<vmem>>, %arg12: memref<4x8x1xf32, #tpu.memory_space<vmem>>, %arg13: memref<4x8x1xf32, #tpu.memory_space<vmem>>, %arg14: memref<8x32xf32, #tpu.memory_space<vmem>>) attributes {dimension_semantics = [#tpu.dimension_semantics<parallel>, #tpu.dimension_semantics<parallel>, #tpu.dimension_semantics<arbitrary>], iteration_bounds = array<i64: 2, 1, 1>, scalar_prefetch = 0 : i64, scratch_operands = 3 : i64, tpu.core_type = #tpu.core_type<tc>, window_params = [{transform_indices = @transform_0, window_bounds = array<i64: 1, 1, 8, 32>}, {transform_indices = @transform_1, window_bounds = array<i64: 1, 1, 8, 32>}, {transform_indices = @transform_2, window_bounds = array<i64: 1, 1, 8, 32>}, {transform_indices = @transform_3, window_bounds = array<i64: 1, 8, 32>}, {pipeline_mode = #tpu.pipeline_mode<synchronous>, transform_indices = @transform_4, window_bounds = array<i64: 32, 32>}, {pipeline_mode = #tpu.pipeline_mode<synchronous>, transform_indices = @transform_5, window_bounds = array<i64: 1, 32>}, {transform_indices = @transform_6, window_bounds = array<i64: 1, 1, 32>}, {transform_indices = @transform_7, window_bounds = array<i64: 1, 1, 32>}, {transform_indices = @transform_8, window_bounds = array<i64: 1, 8, 32>}]} {
    %c0_i32 = arith.constant 0 : i32
    %0 = arith.cmpi eq, %arg2, %c0_i32 : i32
    %1 = arith.extui %0 : i1 to i32
    %c0_i32_0 = arith.constant 0 : i32
    %2 = arith.cmpi ne, %1, %c0_i32_0 : i32
    scf.if %2 {
      %cst = arith.constant 0xFF800000 : f32
      %12 = vector.broadcast %cst : f32 to vector<4x8x1xf32>
      %c0 = arith.constant 0 : index
      %c0_5 = arith.constant 0 : index
      %c0_6 = arith.constant 0 : index
      %13 = vector.load %arg12[%c0, %c0_5, %c0_6] : memref<4x8x1xf32, #tpu.memory_space<vmem>>, vector<4x8x1xf32>
      tpu.vector_store %arg12[%c0, %c0_5, %c0_6], %12 {strides = array<i32>} : memref<4x8x1xf32, #tpu.memory_space<vmem>>, vector<4x8x1xf32>,
      %cst_7 = arith.constant 0.000000e+00 : f32
      %14 = vector.broadcast %cst_7 : f32 to vector<4x8x1xf32>
      %c0_8 = arith.constant 0 : index
      %c0_9 = arith.constant 0 : index
      %c0_10 = arith.constant 0 : index
      %15 = vector.load %arg13[%c0_8, %c0_9, %c0_10] : memref<4x8x1xf32, #tpu.memory_space<vmem>>, vector<4x8x1xf32>
      tpu.vector_store %arg13[%c0_8, %c0_9, %c0_10], %14 {strides = array<i32>} : memref<4x8x1xf32, #tpu.memory_space<vmem>>, vector<4x8x1xf32>,
      %cst_11 = arith.constant 0.000000e+00 : f32
      %16 = vector.broadcast %cst_11 : f32 to vector<8x32xf32>
      %c0_12 = arith.constant 0 : index
      %c0_13 = arith.constant 0 : index
      %17 = vector.load %arg14[%c0_12, %c0_13] : memref<8x32xf32, #tpu.memory_space<vmem>>, vector<8x32xf32>
      tpu.vector_store %arg14[%c0_12, %c0_13], %16 {strides = array<i32>} : memref<8x32xf32, #tpu.memory_space<vmem>>, vector<8x32xf32>,
    } else {
    }
    %c8_i32 = arith.constant 8 : i32
    %3 = arith.muli %arg2, %c8_i32 : i32
    %c1_i32 = arith.constant 1 : i32
    %4 = arith.addi %arg1, %c1_i32 : i32
    %c8_i32_1 = arith.constant 8 : i32
    %5 = arith.muli %4, %c8_i32_1 : i32
    %6 = arith.cmpi slt, %3, %5 : i32
    %7 = arith.extui %6 : i1 to i32
    %c0_i32_2 = arith.constant 0 : i32
    %8 = arith.cmpi ne, %7, %c0_i32_2 : i32
    scf.if %8 {
      %c0 = arith.constant 0 : index
      %c0_5 = arith.constant 0 : index
      %c0_6 = arith.constant 0 : index
      %c0_7 = arith.constant 0 : index
      %12 = vector.load %arg3[%c0, %c0_5, %c0_6, %c0_7] : memref<1x1x8x32xbf16, #tpu.memory_space<vmem>>, vector<1x1x8x32xbf16>
      %13 = vector.shape_cast %12 : vector<1x1x8x32xbf16> to vector<8x32xbf16>
      %c0_8 = arith.constant 0 : index
      %c0_9 = arith.constant 0 : index
      %c0_10 = arith.constant 0 : index
      %c0_11 = arith.constant 0 : index
      %14 = vector.load %arg4[%c0_8, %c0_9, %c0_10, %c0_11] : memref<1x1x8x32xbf16, #tpu.memory_space<vmem>>, vector<1x1x8x32xbf16>
      %15 = vector.shape_cast %14 : vector<1x1x8x32xbf16> to vector<8x32xbf16>
      %c0_12 = arith.constant 0 : index
      %c0_13 = arith.constant 0 : index
      %c0_14 = arith.constant 0 : index
      %c0_15 = arith.constant 0 : index
      %16 = vector.load %arg5[%c0_12, %c0_13, %c0_14, %c0_15] : memref<1x1x8x32xbf16, #tpu.memory_space<vmem>>, vector<1x1x8x32xbf16>
      %17 = vector.shape_cast %16 : vector<1x1x8x32xbf16> to vector<8x32xbf16>
      %c8_i32_16 = arith.constant 8 : i32
      %18 = arith.muli %arg1, %c8_i32_16 : i32
      %19 = tpu.iota {dimensions = array<i32: 0>} : vector<8x8xi32>
      %20 = vector.broadcast %18 : i32 to vector<8x8xi32>
      %21 = arith.addi %20, %19 : vector<8x8xi32>
      %c8_i32_17 = arith.constant 8 : i32
      %22 = arith.muli %arg2, %c8_i32_17 : i32
      %23 = tpu.iota {dimensions = array<i32: 1>} : vector<8x8xi32>
      %24 = vector.broadcast %22 : i32 to vector<8x8xi32>
      %25 = arith.addi %24, %23 : vector<8x8xi32>
      %26 = arith.cmpi sle, %25, %21 : vector<8x8xi32>
      %27 = vector.extract_strided_slice %13 {offsets = [0, 0], sizes = [8, 8], strides = [1, 1]} : vector<8x32xbf16> to vector<8x8xbf16>
      %28 = vector.extract_strided_slice %15 {offsets = [0, 0], sizes = [8, 8], strides = [1, 1]} : vector<8x32xbf16> to vector<8x8xbf16>
      %29 = vector.extract_strided_slice %17 {offsets = [0, 0], sizes = [8, 8], strides = [1, 1]} : vector<8x32xbf16> to vector<8x8xbf16>
      %30 = tpu.transpose %28, [1, 0] : vector<8x8xbf16> -> vector<8x8xbf16>
      %cst = arith.constant dense<0.000000e+00> : vector<8x8xf32>
      %31 = tpu.matmul %27, %30, %cst {dimension_numbers = #tpu.dot_dimension_numbers<[1], [0], [0], [1], [0, 0, 1, 1], [], []>} : vector<8x8xbf16>, vector<8x8xbf16>, vector<8x8xf32> -> vector<8x8xf32>
      %cst_18 = arith.constant 0.353553385 : f32
      %32 = vector.broadcast %cst_18 : f32 to vector<8x8xf32>
      %33 = arith.mulf %31, %32 : vector<8x8xf32>
      %cst_19 = arith.constant -3.40282347E+38 : f32
      %34 = vector.broadcast %cst_19 : f32 to vector<8x8xf32>
      %35 = arith.select %26, %33, %34 : vector<8x8xi1>, vector<8x8xf32>
      %c0_20 = arith.constant 0 : index
      %c0_21 = arith.constant 0 : index
      %c0_22 = arith.constant 0 : index
      %36 = vector.load %arg12[%c0_20, %c0_21, %c0_22] : memref<4x8x1xf32, #tpu.memory_space<vmem>>, vector<1x8x1xf32>
      %37 = vector.shape_cast %36 : vector<1x8x1xf32> to vector<8x1xf32>
      %cst_23 = arith.constant dense<0xFF800000> : vector<8xf32>
      %38 = vector.multi_reduction <maximumf>, %35, %cst_23 [1] : vector<8x8xf32> to vector<8xf32>
      %39 = vector.shape_cast %38 : vector<8xf32> to vector<8x1xf32>
      %40 = arith.maximumf %37, %39 : vector<8x1xf32>
      %41 = arith.subf %37, %40 : vector<8x1xf32>
      %42 = math.exp %41 : vector<8x1xf32>
      %43 = vector.broadcast %40 : vector<8x1xf32> to vector<8x8xf32>
      %44 = arith.subf %35, %43 : vector<8x8xf32>
      %45 = math.exp %44 : vector<8x8xf32>
      %c0_24 = arith.constant 0 : index
      %c0_25 = arith.constant 0 : index
      %c0_26 = arith.constant 0 : index
      %46 = vector.load %arg13[%c0_24, %c0_25, %c0_26] : memref<4x8x1xf32, #tpu.memory_space<vmem>>, vector<1x8x1xf32>
      %47 = vector.shape_cast %46 : vector<1x8x1xf32> to vector<8x1xf32>
      %48 = arith.mulf %42, %47 : vector<8x1xf32>
      %cst_27 = arith.constant dense<0.000000e+00> : vector<8xf32>
      %49 = vector.multi_reduction <add>, %45, %cst_27 [1] : vector<8x8xf32> to vector<8xf32>
      %50 = vector.shape_cast %49 : vector<8xf32> to vector<8x1xf32>
      %51 = arith.addf %48, %50 : vector<8x1xf32>
      %c0_28 = arith.constant 0 : index
      %c0_29 = arith.constant 0 : index
      %c0_30 = arith.constant 0 : index
      %52 = vector.load %arg13[%c0_28, %c0_29, %c0_30] : memref<4x8x1xf32, #tpu.memory_space<vmem>>, vector<1x8x1xf32>
      %53 = vector.shape_cast %52 : vector<1x8x1xf32> to vector<8x1xf32>
      %54 = vector.shape_cast %51 : vector<8x1xf32> to vector<1x8x1xf32>
      tpu.vector_store %arg13[%c0_28, %c0_29, %c0_30], %54 {strides = array<i32>} : memref<4x8x1xf32, #tpu.memory_space<vmem>>, vector<1x8x1xf32>,
      %c0_31 = arith.constant 0 : index
      %c0_32 = arith.constant 0 : index
      %55 = vector.load %arg14[%c0_31, %c0_32] : memref<8x32xf32, #tpu.memory_space<vmem>>, vector<8x8xf32>
      %56 = vector.broadcast %42 : vector<8x1xf32> to vector<8x8xf32>
      %57 = arith.mulf %56, %55 : vector<8x8xf32>
      %58 = arith.truncf %45 : vector<8x8xf32> to vector<8x8xbf16>
      %cst_33 = arith.constant dense<0.000000e+00> : vector<8x8xf32>
      %59 = tpu.matmul %58, %29, %cst_33 {dimension_numbers = #tpu.dot_dimension_numbers<[1], [0], [0], [1], [0, 0, 1, 1], [], []>} : vector<8x8xbf16>, vector<8x8xbf16>, vector<8x8xf32> -> vector<8x8xf32>
      %60 = arith.addf %57, %59 : vector<8x8xf32>
      %c0_34 = arith.constant 0 : index
      %c0_35 = arith.constant 0 : index
      %61 = vector.load %arg14[%c0_34, %c0_35] : memref<8x32xf32, #tpu.memory_space<vmem>>, vector<8x8xf32>
      tpu.vector_store %arg14[%c0_34, %c0_35], %60 {strides = array<i32>} : memref<8x32xf32, #tpu.memory_space<vmem>>, vector<8x8xf32>,
      %c0_36 = arith.constant 0 : index
      %c0_37 = arith.constant 0 : index
      %c0_38 = arith.constant 0 : index
      %62 = vector.load %arg12[%c0_36, %c0_37, %c0_38] : memref<4x8x1xf32, #tpu.memory_space<vmem>>, vector<1x8x1xf32>
      %63 = vector.shape_cast %62 : vector<1x8x1xf32> to vector<8x1xf32>
      %64 = vector.shape_cast %40 : vector<8x1xf32> to vector<1x8x1xf32>
      tpu.vector_store %arg12[%c0_36, %c0_37, %c0_38], %64 {strides = array<i32>} : memref<4x8x1xf32, #tpu.memory_space<vmem>>, vector<1x8x1xf32>,
      %65 = vector.extract_strided_slice %13 {offsets = [0, 8], sizes = [8, 8], strides = [1, 1]} : vector<8x32xbf16> to vector<8x8xbf16>
      %66 = vector.extract_strided_slice %15 {offsets = [0, 8], sizes = [8, 8], strides = [1, 1]} : vector<8x32xbf16> to vector<8x8xbf16>
      %67 = vector.extract_strided_slice %17 {offsets = [0, 8], sizes = [8, 8], strides = [1, 1]} : vector<8x32xbf16> to vector<8x8xbf16>
      %68 = tpu.transpose %66, [1, 0] : vector<8x8xbf16> -> vector<8x8xbf16>
      %cst_39 = arith.constant dense<0.000000e+00> : vector<8x8xf32>
      %69 = tpu.matmul %65, %68, %cst_39 {dimension_numbers = #tpu.dot_dimension_numbers<[1], [0], [0], [1], [0, 0, 1, 1], [], []>} : vector<8x8xbf16>, vector<8x8xbf16>, vector<8x8xf32> -> vector<8x8xf32>
      %cst_40 = arith.constant 0.353553385 : f32
      %70 = vector.broadcast %cst_40 : f32 to vector<8x8xf32>
      %71 = arith.mulf %69, %70 : vector<8x8xf32>
      %cst_41 = arith.constant -3.40282347E+38 : f32
      %72 = vector.broadcast %cst_41 : f32 to vector<8x8xf32>
      %73 = arith.select %26, %71, %72 : vector<8x8xi1>, vector<8x8xf32>
      %c1 = arith.constant 1 : index
      %c0_42 = arith.constant 0 : index
      %c0_43 = arith.constant 0 : index
      %74 = vector.load %arg12[%c1, %c0_42, %c0_43] : memref<4x8x1xf32, #tpu.memory_space<vmem>>, vector<1x8x1xf32>
      %75 = vector.shape_cast %74 : vector<1x8x1xf32> to vector<8x1xf32>
      %cst_44 = arith.constant dense<0xFF800000> : vector<8xf32>
      %76 = vector.multi_reduction <maximumf>, %73, %cst_44 [1] : vector<8x8xf32> to vector<8xf32>
      %77 = vector.shape_cast %76 : vector<8xf32> to vector<8x1xf32>
      %78 = arith.maximumf %75, %77 : vector<8x1xf32>
      %79 = arith.subf %75, %78 : vector<8x1xf32>
      %80 = math.exp %79 : vector<8x1xf32>
      %81 = vector.broadcast %78 : vector<8x1xf32> to vector<8x8xf32>
      %82 = arith.subf %73, %81 : vector<8x8xf32>
      %83 = math.exp %82 : vector<8x8xf32>
      %c1_45 = arith.constant 1 : index
      %c0_46 = arith.constant 0 : index
      %c0_47 = arith.constant 0 : index
      %84 = vector.load %arg13[%c1_45, %c0_46, %c0_47] : memref<4x8x1xf32, #tpu.memory_space<vmem>>, vector<1x8x1xf32>
      %85 = vector.shape_cast %84 : vector<1x8x1xf32> to vector<8x1xf32>
      %86 = arith.mulf %80, %85 : vector<8x1xf32>
      %cst_48 = arith.constant dense<0.000000e+00> : vector<8xf32>
      %87 = vector.multi_reduction <add>, %83, %cst_48 [1] : vector<8x8xf32> to vector<8xf32>
      %88 = vector.shape_cast %87 : vector<8xf32> to vector<8x1xf32>
      %89 = arith.addf %86, %88 : vector<8x1xf32>
      %c1_49 = arith.constant 1 : index
      %c0_50 = arith.constant 0 : index
      %c0_51 = arith.constant 0 : index
      %90 = vector.load %arg13[%c1_49, %c0_50, %c0_51] : memref<4x8x1xf32, #tpu.memory_space<vmem>>, vector<1x8x1xf32>
      %91 = vector.shape_cast %90 : vector<1x8x1xf32> to vector<8x1xf32>
      %92 = vector.shape_cast %89 : vector<8x1xf32> to vector<1x8x1xf32>
      tpu.vector_store %arg13[%c1_49, %c0_50, %c0_51], %92 {strides = array<i32>} : memref<4x8x1xf32, #tpu.memory_space<vmem>>, vector<1x8x1xf32>,
      %c0_52 = arith.constant 0 : index
      %c8 = arith.constant 8 : index
      %93 = vector.load %arg14[%c0_52, %c8] : memref<8x32xf32, #tpu.memory_space<vmem>>, vector<8x8xf32>
      %94 = vector.broadcast %80 : vector<8x1xf32> to vector<8x8xf32>
      %95 = arith.mulf %94, %93 : vector<8x8xf32>
      %96 = arith.truncf %83 : vector<8x8xf32> to vector<8x8xbf16>
      %cst_53 = arith.constant dense<0.000000e+00> : vector<8x8xf32>
      %97 = tpu.matmul %96, %67, %cst_53 {dimension_numbers = #tpu.dot_dimension_numbers<[1], [0], [0], [1], [0, 0, 1, 1], [], []>} : vector<8x8xbf16>, vector<8x8xbf16>, vector<8x8xf32> -> vector<8x8xf32>
      %98 = arith.addf %95, %97 : vector<8x8xf32>
      %c0_54 = arith.constant 0 : index
      %c8_55 = arith.constant 8 : index
      %99 = vector.load %arg14[%c0_54, %c8_55] : memref<8x32xf32, #tpu.memory_space<vmem>>, vector<8x8xf32>
      tpu.vector_store %arg14[%c0_54, %c8_55], %98 {strides = array<i32>} : memref<8x32xf32, #tpu.memory_space<vmem>>, vector<8x8xf32>,
      %c1_56 = arith.constant 1 : index
      %c0_57 = arith.constant 0 : index
      %c0_58 = arith.constant 0 : index
      %100 = vector.load %arg12[%c1_56, %c0_57, %c0_58] : memref<4x8x1xf32, #tpu.memory_space<vmem>>, vector<1x8x1xf32>
      %101 = vector.shape_cast %100 : vector<1x8x1xf32> to vector<8x1xf32>
      %102 = vector.shape_cast %78 : vector<8x1xf32> to vector<1x8x1xf32>
      tpu.vector_store %arg12[%c1_56, %c0_57, %c0_58], %102 {strides = array<i32>} : memref<4x8x1xf32, #tpu.memory_space<vmem>>, vector<1x8x1xf32>,
      %103 = vector.extract_strided_slice %13 {offsets = [0, 16], sizes = [8, 8], strides = [1, 1]} : vector<8x32xbf16> to vector<8x8xbf16>
      %104 = vector.extract_strided_slice %15 {offsets = [0, 16], sizes = [8, 8], strides = [1, 1]} : vector<8x32xbf16> to vector<8x8xbf16>
      %105 = vector.extract_strided_slice %17 {offsets = [0, 16], sizes = [8, 8], strides = [1, 1]} : vector<8x32xbf16> to vector<8x8xbf16>
      %106 = tpu.transpose %104, [1, 0] : vector<8x8xbf16> -> vector<8x8xbf16>
      %cst_59 = arith.constant dense<0.000000e+00> : vector<8x8xf32>
      %107 = tpu.matmul %103, %106, %cst_59 {dimension_numbers = #tpu.dot_dimension_numbers<[1], [0], [0], [1], [0, 0, 1, 1], [], []>} : vector<8x8xbf16>, vector<8x8xbf16>, vector<8x8xf32> -> vector<8x8xf32>
      %cst_60 = arith.constant 0.353553385 : f32
      %108 = vector.broadcast %cst_60 : f32 to vector<8x8xf32>
      %109 = arith.mulf %107, %108 : vector<8x8xf32>
      %cst_61 = arith.constant -3.40282347E+38 : f32
      %110 = vector.broadcast %cst_61 : f32 to vector<8x8xf32>
      %111 = arith.select %26, %109, %110 : vector<8x8xi1>, vector<8x8xf32>
      %c2 = arith.constant 2 : index
      %c0_62 = arith.constant 0 : index
      %c0_63 = arith.constant 0 : index
      %112 = vector.load %arg12[%c2, %c0_62, %c0_63] : memref<4x8x1xf32, #tpu.memory_space<vmem>>, vector<1x8x1xf32>
      %113 = vector.shape_cast %112 : vector<1x8x1xf32> to vector<8x1xf32>
      %cst_64 = arith.constant dense<0xFF800000> : vector<8xf32>
      %114 = vector.multi_reduction <maximumf>, %111, %cst_64 [1] : vector<8x8xf32> to vector<8xf32>
      %115 = vector.shape_cast %114 : vector<8xf32> to vector<8x1xf32>
      %116 = arith.maximumf %113, %115 : vector<8x1xf32>
      %117 = arith.subf %113, %116 : vector<8x1xf32>
      %118 = math.exp %117 : vector<8x1xf32>
      %119 = vector.broadcast %116 : vector<8x1xf32> to vector<8x8xf32>
      %120 = arith.subf %111, %119 : vector<8x8xf32>
      %121 = math.exp %120 : vector<8x8xf32>
      %c2_65 = arith.constant 2 : index
      %c0_66 = arith.constant 0 : index
      %c0_67 = arith.constant 0 : index
      %122 = vector.load %arg13[%c2_65, %c0_66, %c0_67] : memref<4x8x1xf32, #tpu.memory_space<vmem>>, vector<1x8x1xf32>
      %123 = vector.shape_cast %122 : vector<1x8x1xf32> to vector<8x1xf32>
      %124 = arith.mulf %118, %123 : vector<8x1xf32>
      %cst_68 = arith.constant dense<0.000000e+00> : vector<8xf32>
      %125 = vector.multi_reduction <add>, %121, %cst_68 [1] : vector<8x8xf32> to vector<8xf32>
      %126 = vector.shape_cast %125 : vector<8xf32> to vector<8x1xf32>
      %127 = arith.addf %124, %126 : vector<8x1xf32>
      %c2_69 = arith.constant 2 : index
      %c0_70 = arith.constant 0 : index
      %c0_71 = arith.constant 0 : index
      %128 = vector.load %arg13[%c2_69, %c0_70, %c0_71] : memref<4x8x1xf32, #tpu.memory_space<vmem>>, vector<1x8x1xf32>
      %129 = vector.shape_cast %128 : vector<1x8x1xf32> to vector<8x1xf32>
      %130 = vector.shape_cast %127 : vector<8x1xf32> to vector<1x8x1xf32>
      tpu.vector_store %arg13[%c2_69, %c0_70, %c0_71], %130 {strides = array<i32>} : memref<4x8x1xf32, #tpu.memory_space<vmem>>, vector<1x8x1xf32>,
      %c0_72 = arith.constant 0 : index
      %c16 = arith.constant 16 : index
      %131 = vector.load %arg14[%c0_72, %c16] : memref<8x32xf32, #tpu.memory_space<vmem>>, vector<8x8xf32>
      %132 = vector.broadcast %118 : vector<8x1xf32> to vector<8x8xf32>
      %133 = arith.mulf %132, %131 : vector<8x8xf32>
      %134 = arith.truncf %121 : vector<8x8xf32> to vector<8x8xbf16>
      %cst_73 = arith.constant dense<0.000000e+00> : vector<8x8xf32>
      %135 = tpu.matmul %134, %105, %cst_73 {dimension_numbers = #tpu.dot_dimension_numbers<[1], [0], [0], [1], [0, 0, 1, 1], [], []>} : vector<8x8xbf16>, vector<8x8xbf16>, vector<8x8xf32> -> vector<8x8xf32>
      %136 = arith.addf %133, %135 : vector<8x8xf32>
      %c0_74 = arith.constant 0 : index
      %c16_75 = arith.constant 16 : index
      %137 = vector.load %arg14[%c0_74, %c16_75] : memref<8x32xf32, #tpu.memory_space<vmem>>, vector<8x8xf32>
      tpu.vector_store %arg14[%c0_74, %c16_75], %136 {strides = array<i32>} : memref<8x32xf32, #tpu.memory_space<vmem>>, vector<8x8xf32>,
      %c2_76 = arith.constant 2 : index
      %c0_77 = arith.constant 0 : index
      %c0_78 = arith.constant 0 : index
      %138 = vector.load %arg12[%c2_76, %c0_77, %c0_78] : memref<4x8x1xf32, #tpu.memory_space<vmem>>, vector<1x8x1xf32>
      %139 = vector.shape_cast %138 : vector<1x8x1xf32> to vector<8x1xf32>
      %140 = vector.shape_cast %116 : vector<8x1xf32> to vector<1x8x1xf32>
      tpu.vector_store %arg12[%c2_76, %c0_77, %c0_78], %140 {strides = array<i32>} : memref<4x8x1xf32, #tpu.memory_space<vmem>>, vector<1x8x1xf32>,
      %141 = vector.extract_strided_slice %13 {offsets = [0, 24], sizes = [8, 8], strides = [1, 1]} : vector<8x32xbf16> to vector<8x8xbf16>
      %142 = vector.extract_strided_slice %15 {offsets = [0, 24], sizes = [8, 8], strides = [1, 1]} : vector<8x32xbf16> to vector<8x8xbf16>
      %143 = vector.extract_strided_slice %17 {offsets = [0, 24], sizes = [8, 8], strides = [1, 1]} : vector<8x32xbf16> to vector<8x8xbf16>
      %144 = tpu.transpose %142, [1, 0] : vector<8x8xbf16> -> vector<8x8xbf16>
      %cst_79 = arith.constant dense<0.000000e+00> : vector<8x8xf32>
      %145 = tpu.matmul %141, %144, %cst_79 {dimension_numbers = #tpu.dot_dimension_numbers<[1], [0], [0], [1], [0, 0, 1, 1], [], []>} : vector<8x8xbf16>, vector<8x8xbf16>, vector<8x8xf32> -> vector<8x8xf32>
      %cst_80 = arith.constant 0.353553385 : f32
      %146 = vector.broadcast %cst_80 : f32 to vector<8x8xf32>
      %147 = arith.mulf %145, %146 : vector<8x8xf32>
      %cst_81 = arith.constant -3.40282347E+38 : f32
      %148 = vector.broadcast %cst_81 : f32 to vector<8x8xf32>
      %149 = arith.select %26, %147, %148 : vector<8x8xi1>, vector<8x8xf32>
      %c3 = arith.constant 3 : index
      %c0_82 = arith.constant 0 : index
      %c0_83 = arith.constant 0 : index
      %150 = vector.load %arg12[%c3, %c0_82, %c0_83] : memref<4x8x1xf32, #tpu.memory_space<vmem>>, vector<1x8x1xf32>
      %151 = vector.shape_cast %150 : vector<1x8x1xf32> to vector<8x1xf32>
      %cst_84 = arith.constant dense<0xFF800000> : vector<8xf32>
      %152 = vector.multi_reduction <maximumf>, %149, %cst_84 [1] : vector<8x8xf32> to vector<8xf32>
      %153 = vector.shape_cast %152 : vector<8xf32> to vector<8x1xf32>
      %154 = arith.maximumf %151, %153 : vector<8x1xf32>
      %155 = arith.subf %151, %154 : vector<8x1xf32>
      %156 = math.exp %155 : vector<8x1xf32>
      %157 = vector.broadcast %154 : vector<8x1xf32> to vector<8x8xf32>
      %158 = arith.subf %149, %157 : vector<8x8xf32>
      %159 = math.exp %158 : vector<8x8xf32>
      %c3_85 = arith.constant 3 : index
      %c0_86 = arith.constant 0 : index
      %c0_87 = arith.constant 0 : index
      %160 = vector.load %arg13[%c3_85, %c0_86, %c0_87] : memref<4x8x1xf32, #tpu.memory_space<vmem>>, vector<1x8x1xf32>
      %161 = vector.shape_cast %160 : vector<1x8x1xf32> to vector<8x1xf32>
      %162 = arith.mulf %156, %161 : vector<8x1xf32>
      %cst_88 = arith.constant dense<0.000000e+00> : vector<8xf32>
      %163 = vector.multi_reduction <add>, %159, %cst_88 [1] : vector<8x8xf32> to vector<8xf32>
      %164 = vector.shape_cast %163 : vector<8xf32> to vector<8x1xf32>
      %165 = arith.addf %162, %164 : vector<8x1xf32>
      %c3_89 = arith.constant 3 : index
      %c0_90 = arith.constant 0 : index
      %c0_91 = arith.constant 0 : index
      %166 = vector.load %arg13[%c3_89, %c0_90, %c0_91] : memref<4x8x1xf32, #tpu.memory_space<vmem>>, vector<1x8x1xf32>
      %167 = vector.shape_cast %166 : vector<1x8x1xf32> to vector<8x1xf32>
      %168 = vector.shape_cast %165 : vector<8x1xf32> to vector<1x8x1xf32>
      tpu.vector_store %arg13[%c3_89, %c0_90, %c0_91], %168 {strides = array<i32>} : memref<4x8x1xf32, #tpu.memory_space<vmem>>, vector<1x8x1xf32>,
      %c0_92 = arith.constant 0 : index
      %c24 = arith.constant 24 : index
      %169 = vector.load %arg14[%c0_92, %c24] : memref<8x32xf32, #tpu.memory_space<vmem>>, vector<8x8xf32>
      %170 = vector.broadcast %156 : vector<8x1xf32> to vector<8x8xf32>
      %171 = arith.mulf %170, %169 : vector<8x8xf32>
      %172 = arith.truncf %159 : vector<8x8xf32> to vector<8x8xbf16>
      %cst_93 = arith.constant dense<0.000000e+00> : vector<8x8xf32>
      %173 = tpu.matmul %172, %143, %cst_93 {dimension_numbers = #tpu.dot_dimension_numbers<[1], [0], [0], [1], [0, 0, 1, 1], [], []>} : vector<8x8xbf16>, vector<8x8xbf16>, vector<8x8xf32> -> vector<8x8xf32>
      %174 = arith.addf %171, %173 : vector<8x8xf32>
      %c0_94 = arith.constant 0 : index
      %c24_95 = arith.constant 24 : index
      %175 = vector.load %arg14[%c0_94, %c24_95] : memref<8x32xf32, #tpu.memory_space<vmem>>, vector<8x8xf32>
      tpu.vector_store %arg14[%c0_94, %c24_95], %174 {strides = array<i32>} : memref<8x32xf32, #tpu.memory_space<vmem>>, vector<8x8xf32>,
      %c3_96 = arith.constant 3 : index
      %c0_97 = arith.constant 0 : index
      %c0_98 = arith.constant 0 : index
      %176 = vector.load %arg12[%c3_96, %c0_97, %c0_98] : memref<4x8x1xf32, #tpu.memory_space<vmem>>, vector<1x8x1xf32>
      %177 = vector.shape_cast %176 : vector<1x8x1xf32> to vector<8x1xf32>
      %178 = vector.shape_cast %154 : vector<8x1xf32> to vector<1x8x1xf32>
      tpu.vector_store %arg12[%c3_96, %c0_97, %c0_98], %178 {strides = array<i32>} : memref<4x8x1xf32, #tpu.memory_space<vmem>>, vector<1x8x1xf32>,
    } else {
    }
    %c0_i32_3 = arith.constant 0 : i32
    %9 = arith.cmpi eq, %arg2, %c0_i32_3 : i32
    %10 = arith.extui %9 : i1 to i32
    %c0_i32_4 = arith.constant 0 : i32
    %11 = arith.cmpi ne, %10, %c0_i32_4 : i32
    scf.if %11 {
      %c0 = arith.constant 0 : index
      %c0_5 = arith.constant 0 : index
      %c0_6 = arith.constant 0 : index
      %12 = vector.load %arg13[%c0, %c0_5, %c0_6] : memref<4x8x1xf32, #tpu.memory_space<vmem>>, vector<1x8x1xf32>
      %13 = vector.shape_cast %12 : vector<1x8x1xf32> to vector<8x1xf32>
      %14 = tpu.reciprocal %13 {approx = true} : vector<8x1xf32> -> vector<8x1xf32>
      %15 = vector.shape_cast %14 : vector<8x1xf32> to vector<8x1xf32>
      %16 = vector.broadcast %15 : vector<8x1xf32> to vector<8x8xf32>
      %c1 = arith.constant 1 : index
      %c0_7 = arith.constant 0 : index
      %c0_8 = arith.constant 0 : index
      %17 = vector.load %arg13[%c1, %c0_7, %c0_8] : memref<4x8x1xf32, #tpu.memory_space<vmem>>, vector<1x8x1xf32>
      %18 = vector.shape_cast %17 : vector<1x8x1xf32> to vector<8x1xf32>
      %19 = tpu.reciprocal %18 {approx = true} : vector<8x1xf32> -> vector<8x1xf32>
      %20 = vector.shape_cast %19 : vector<8x1xf32> to vector<8x1xf32>
      %21 = vector.broadcast %20 : vector<8x1xf32> to vector<8x8xf32>
      %c2 = arith.constant 2 : index
      %c0_9 = arith.constant 0 : index
      %c0_10 = arith.constant 0 : index
      %22 = vector.load %arg13[%c2, %c0_9, %c0_10] : memref<4x8x1xf32, #tpu.memory_space<vmem>>, vector<1x8x1xf32>
      %23 = vector.shape_cast %22 : vector<1x8x1xf32> to vector<8x1xf32>
      %24 = tpu.reciprocal %23 {approx = true} : vector<8x1xf32> -> vector<8x1xf32>
      %25 = vector.shape_cast %24 : vector<8x1xf32> to vector<8x1xf32>
      %26 = vector.broadcast %25 : vector<8x1xf32> to vector<8x8xf32>
      %c3 = arith.constant 3 : index
      %c0_11 = arith.constant 0 : index
      %c0_12 = arith.constant 0 : index
      %27 = vector.load %arg13[%c3, %c0_11, %c0_12] : memref<4x8x1xf32, #tpu.memory_space<vmem>>, vector<1x8x1xf32>
      %28 = vector.shape_cast %27 : vector<1x8x1xf32> to vector<8x1xf32>
      %29 = tpu.reciprocal %28 {approx = true} : vector<8x1xf32> -> vector<8x1xf32>
      %30 = vector.shape_cast %29 : vector<8x1xf32> to vector<8x1xf32>
      %31 = vector.broadcast %30 : vector<8x1xf32> to vector<8x8xf32>
      %32 = tpu.concatenate %16, %21, %26, %31 in 1 : vector<8x8xf32>, vector<8x8xf32>, vector<8x8xf32>, vector<8x8xf32> -> vector<8x32xf32>
      %c0_13 = arith.constant 0 : index
      %c0_14 = arith.constant 0 : index
      %33 = vector.load %arg14[%c0_13, %c0_14] : memref<8x32xf32, #tpu.memory_space<vmem>>, vector<8x32xf32>
      %34 = arith.mulf %33, %32 : vector<8x32xf32>
      %35 = arith.truncf %34 : vector<8x32xf32> to vector<8x32xbf16>
      %c0_15 = arith.constant 0 : index
      %c0_16 = arith.constant 0 : index
      %36 = vector.load %arg7[%c0_15, %c0_16] : memref<32x32xbf16, #tpu.memory_space<vmem>>, vector<32x32xbf16>
      %cst = arith.constant dense<0.000000e+00> : vector<8x32xf32>
      %37 = tpu.matmul %35, %36, %cst {dimension_numbers = #tpu.dot_dimension_numbers<[1], [0], [0], [1], [0, 0, 1, 1], [], []>} : vector<8x32xbf16>, vector<32x32xbf16>, vector<8x32xf32> -> vector<8x32xf32>
      %c0_17 = arith.constant 0 : index
      %c0_18 = arith.constant 0 : index
      %38 = vector.load %arg8[%c0_17, %c0_18] : memref<1x32xf32, #tpu.memory_space<vmem>>, vector<1x32xf32>
      %39 = vector.broadcast %38 : vector<1x32xf32> to vector<8x32xf32>
      %40 = arith.addf %37, %39 : vector<8x32xf32>
      %c0_19 = arith.constant 0 : index
      %c0_20 = arith.constant 0 : index
      %c0_21 = arith.constant 0 : index
      %41 = vector.load %arg6[%c0_19, %c0_20, %c0_21] : memref<1x8x32xf32, #tpu.memory_space<vmem>>, vector<1x8x32xf32>
      %42 = vector.shape_cast %41 : vector<1x8x32xf32> to vector<8x32xf32>
      %43 = arith.addf %40, %42 : vector<8x32xf32>
      %c0_22 = arith.constant 0 : index
      %c0_23 = arith.constant 0 : index
      %c0_24 = arith.constant 0 : index
      %44 = vector.load %arg9[%c0_22, %c0_23, %c0_24] : memref<1x1x32xf32, #tpu.memory_space<vmem>>, vector<1x1x32xf32>
      %45 = vector.shape_cast %44 : vector<1x1x32xf32> to vector<1x32xf32>
      %46 = vector.broadcast %45 : vector<1x32xf32> to vector<8x32xf32>
      %47 = arith.mulf %46, %43 : vector<8x32xf32>
      %c0_25 = arith.constant 0 : index
      %c0_26 = arith.constant 0 : index
      %c0_27 = arith.constant 0 : index
      %48 = vector.load %arg10[%c0_25, %c0_26, %c0_27] : memref<1x1x32xf32, #tpu.memory_space<vmem>>, vector<1x1x32xf32>
      %49 = vector.shape_cast %48 : vector<1x1x32xf32> to vector<1x32xf32>
      %50 = vector.broadcast %49 : vector<1x32xf32> to vector<8x32xf32>
      %51 = arith.addf %47, %50 : vector<8x32xf32>
      %c0_28 = arith.constant 0 : index
      %c0_29 = arith.constant 0 : index
      %c0_30 = arith.constant 0 : index
      %52 = vector.load %arg11[%c0_28, %c0_29, %c0_30] : memref<1x8x32xf32, #tpu.memory_space<vmem>>, vector<1x8x32xf32>
      %53 = vector.shape_cast %52 : vector<1x8x32xf32> to vector<8x32xf32>
      %54 = vector.shape_cast %51 : vector<8x32xf32> to vector<1x8x32xf32>
      tpu.vector_store %arg11[%c0_28, %c0_29, %c0_30], %54 {strides = array<i32>} : memref<1x8x32xf32, #tpu.memory_space<vmem>>, vector<1x8x32xf32>,
    } else {
    }
    return
  }
  func.func @transform_0(%arg0: i32, %arg1: i32, %arg2: i32) -> (i32, i32, i32, i32) {
    %c0_i32 = arith.constant 0 : i32
    %c0_i32_0 = arith.constant 0 : i32
    %c0_i32_1 = arith.constant 0 : i32
    return %arg0, %c0_i32, %arg1, %c0_i32_0 : i32, i32, i32, i32
  }
  func.func @transform_1(%arg0: i32, %arg1: i32, %arg2: i32) -> (i32, i32, i32, i32) {
    %0 = arith.minsi %arg2, %arg1 : i32
    %c1_i32 = arith.constant 1 : i32
    %c0_i32 = arith.constant 0 : i32
    %c0_i32_0 = arith.constant 0 : i32
    return %arg0, %c1_i32, %0, %c0_i32 : i32, i32, i32, i32
  }
  func.func @transform_2(%arg0: i32, %arg1: i32, %arg2: i32) -> (i32, i32, i32, i32) {
    %0 = arith.minsi %arg2, %arg1 : i32
    %c2_i32 = arith.constant 2 : i32
    %c0_i32 = arith.constant 0 : i32
    %c0_i32_0 = arith.constant 0 : i32
    return %arg0, %c2_i32, %0, %c0_i32 : i32, i32, i32, i32
  }
  func.func @transform_3(%arg0: i32, %arg1: i32, %arg2: i32) -> (i32, i32, i32) {
    %c0_i32 = arith.constant 0 : i32
    %c0_i32_0 = arith.constant 0 : i32
    return %arg0, %arg1, %c0_i32 : i32, i32, i32
  }
  func.func @transform_4(%arg0: i32, %arg1: i32, %arg2: i32) -> (i32, i32) {
    %c0_i32 = arith.constant 0 : i32
    %c0_i32_0 = arith.constant 0 : i32
    %c0_i32_1 = arith.constant 0 : i32
    return %c0_i32, %c0_i32_0 : i32, i32
  }
  func.func @transform_5(%arg0: i32, %arg1: i32, %arg2: i32) -> (i32, i32) {
    %c0_i32 = arith.constant 0 : i32
    %c0_i32_0 = arith.constant 0 : i32
    %c0_i32_1 = arith.constant 0 : i32
    return %c0_i32, %c0_i32_0 : i32, i32
  }
  func.func @transform_6(%arg0: i32, %arg1: i32, %arg2: i32) -> (i32, i32, i32) {
    %c0_i32 = arith.constant 0 : i32
    %c0_i32_0 = arith.constant 0 : i32
    %c0_i32_1 = arith.constant 0 : i32
    return %arg0, %c0_i32, %c0_i32_0 : i32, i32, i32
  }
  func.func @transform_7(%arg0: i32, %arg1: i32, %arg2: i32) -> (i32, i32, i32) {
    %c0_i32 = arith.constant 0 : i32
    %c0_i32_0 = arith.constant 0 : i32
    %c0_i32_1 = arith.constant 0 : i32
    return %arg0, %c0_i32, %c0_i32_0 : i32, i32, i32
  }
  func.func @transform_8(%arg0: i32, %arg1: i32, %arg2: i32) -> (i32, i32, i32) {
    %c0_i32 = arith.constant 0 : i32
    %c0_i32_0 = arith.constant 0 : i32
    return %arg0, %arg1, %c0_i32 : i32, i32, i32
  }
}

module attributes {stable_mosaic.version = 11 : i64} {
  func.func @_mlp_kernel(%arg0: i32, %arg1: i32, %arg2: i32, %arg3: memref<1x8x32xf32, #tpu.memory_space<vmem>>, %arg4: memref<1x32xf32, #tpu.memory_space<vmem>>, %arg5: memref<1x32xf32, #tpu.memory_space<vmem>>, %arg6: memref<32x128xbf16, #tpu.memory_space<vmem>>, %arg7: memref<1x128xf32, #tpu.memory_space<vmem>>, %arg8: memref<128x32xbf16, #tpu.memory_space<vmem>>, %arg9: memref<1x32xf32, #tpu.memory_space<vmem>>, %arg10: memref<1x1x32xf32, #tpu.memory_space<vmem>>, %arg11: memref<1x1x32xf32, #tpu.memory_space<vmem>>, %arg12: memref<1x8x32xf32, #tpu.memory_space<vmem>>, %arg13: memref<8x32xf32, #tpu.memory_space<vmem>>, %arg14: memref<8x32xbf16, #tpu.memory_space<vmem>>) attributes {dimension_semantics = [#tpu.dimension_semantics<parallel>, #tpu.dimension_semantics<parallel>, #tpu.dimension_semantics<arbitrary>], iteration_bounds = array<i64: 2, 1, 1>, scalar_prefetch = 0 : i64, scratch_operands = 2 : i64, tpu.core_type = #tpu.core_type<tc>, window_params = [{transform_indices = @transform_0, window_bounds = array<i64: 1, 8, 32>}, {pipeline_mode = #tpu.pipeline_mode<synchronous>, transform_indices = @transform_1, window_bounds = array<i64: 1, 32>}, {pipeline_mode = #tpu.pipeline_mode<synchronous>, transform_indices = @transform_2, window_bounds = array<i64: 1, 32>}, {transform_indices = @transform_3, window_bounds = array<i64: 32, 128>}, {transform_indices = @transform_4, window_bounds = array<i64: 1, 128>}, {transform_indices = @transform_5, window_bounds = array<i64: 128, 32>}, {pipeline_mode = #tpu.pipeline_mode<synchronous>, transform_indices = @transform_6, window_bounds = array<i64: 1, 32>}, {transform_indices = @transform_7, window_bounds = array<i64: 1, 1, 32>}, {transform_indices = @transform_8, window_bounds = array<i64: 1, 1, 32>}, {transform_indices = @transform_9, window_bounds = array<i64: 1, 8, 32>}]} {
    %c0_i32 = arith.constant 0 : i32
    %0 = arith.cmpi eq, %arg2, %c0_i32 : i32
    %1 = arith.extui %0 : i1 to i32
    %c0_i32_0 = arith.constant 0 : i32
    %2 = arith.cmpi ne, %1, %c0_i32_0 : i32
    scf.if %2 {
      %cst_19 = arith.constant 0.000000e+00 : f32
      %31 = vector.broadcast %cst_19 : f32 to vector<8x32xf32>
      %c0_20 = arith.constant 0 : index
      %c0_21 = arith.constant 0 : index
      %32 = vector.load %arg13[%c0_20, %c0_21] : memref<8x32xf32, #tpu.memory_space<vmem>>, vector<8x32xf32>
      tpu.vector_store %arg13[%c0_20, %c0_21], %31 {strides = array<i32>} : memref<8x32xf32, #tpu.memory_space<vmem>>, vector<8x32xf32>,
      %c0_22 = arith.constant 0 : index
      %c0_23 = arith.constant 0 : index
      %c0_24 = arith.constant 0 : index
      %33 = vector.load %arg3[%c0_22, %c0_23, %c0_24] : memref<1x8x32xf32, #tpu.memory_space<vmem>>, vector<1x8x32xf32>
      %34 = vector.shape_cast %33 : vector<1x8x32xf32> to vector<8x32xf32>
      %c0_25 = arith.constant 0 : index
      %c0_26 = arith.constant 0 : index
      %35 = vector.load %arg4[%c0_25, %c0_26] : memref<1x32xf32, #tpu.memory_space<vmem>>, vector<1x32xf32>
      %c0_27 = arith.constant 0 : index
      %c0_28 = arith.constant 0 : index
      %36 = vector.load %arg5[%c0_27, %c0_28] : memref<1x32xf32, #tpu.memory_space<vmem>>, vector<1x32xf32>
      %cst_29 = arith.constant dense<0.000000e+00> : vector<8xf32>
      %37 = vector.multi_reduction <add>, %34, %cst_29 [1] : vector<8x32xf32> to vector<8xf32>
      %38 = vector.shape_cast %37 : vector<8xf32> to vector<8x1xf32>
      %cst_30 = arith.constant 3.200000e+01 : f32
      %39 = vector.broadcast %cst_30 : f32 to vector<8x1xf32>
      %40 = arith.divf %38, %39 : vector<8x1xf32>
      %41 = vector.broadcast %40 : vector<8x1xf32> to vector<8x32xf32>
      %42 = arith.subf %34, %41 : vector<8x32xf32>
      %43 = arith.mulf %42, %42 : vector<8x32xf32>
      %cst_31 = arith.constant dense<0.000000e+00> : vector<8xf32>
      %44 = vector.multi_reduction <add>, %43, %cst_31 [1] : vector<8x32xf32> to vector<8xf32>
      %45 = vector.shape_cast %44 : vector<8xf32> to vector<8x1xf32>
      %cst_32 = arith.constant 3.200000e+01 : f32
      %46 = vector.broadcast %cst_32 : f32 to vector<8x1xf32>
      %47 = arith.divf %45, %46 : vector<8x1xf32>
      %48 = vector.broadcast %40 : vector<8x1xf32> to vector<8x32xf32>
      %49 = arith.subf %34, %48 : vector<8x32xf32>
      %cst_33 = arith.constant 9.99999974E-6 : f32
      %50 = vector.broadcast %cst_33 : f32 to vector<8x1xf32>
      %51 = arith.addf %47, %50 : vector<8x1xf32>
      %52 = math.rsqrt %51 : vector<8x1xf32>
      %53 = vector.broadcast %52 : vector<8x1xf32> to vector<8x32xf32>
      %54 = arith.mulf %49, %53 : vector<8x32xf32>
      %55 = vector.broadcast %35 : vector<1x32xf32> to vector<8x32xf32>
      %56 = arith.mulf %54, %55 : vector<8x32xf32>
      %57 = vector.broadcast %36 : vector<1x32xf32> to vector<8x32xf32>
      %58 = arith.addf %56, %57 : vector<8x32xf32>
      %59 = arith.truncf %58 : vector<8x32xf32> to vector<8x32xbf16>
      %c0_34 = arith.constant 0 : index
      %c0_35 = arith.constant 0 : index
      %60 = vector.load %arg14[%c0_34, %c0_35] : memref<8x32xbf16, #tpu.memory_space<vmem>>, vector<8x32xbf16>
      tpu.vector_store %arg14[%c0_34, %c0_35], %59 {strides = array<i32>} : memref<8x32xbf16, #tpu.memory_space<vmem>>, vector<8x32xbf16>,
    } else {
    }
    %c0 = arith.constant 0 : index
    %c0_1 = arith.constant 0 : index
    %3 = vector.load %arg14[%c0, %c0_1] : memref<8x32xbf16, #tpu.memory_space<vmem>>, vector<8x32xbf16>
    %c0_2 = arith.constant 0 : index
    %c0_3 = arith.constant 0 : index
    %4 = vector.load %arg6[%c0_2, %c0_3] : memref<32x128xbf16, #tpu.memory_space<vmem>>, vector<32x128xbf16>
    %cst = arith.constant dense<0.000000e+00> : vector<8x128xf32>
    %5 = tpu.matmul %3, %4, %cst {dimension_numbers = #tpu.dot_dimension_numbers<[1], [0], [0], [1], [0, 0, 1, 1], [], []>} : vector<8x32xbf16>, vector<32x128xbf16>, vector<8x128xf32> -> vector<8x128xf32>
    %c0_4 = arith.constant 0 : index
    %c0_5 = arith.constant 0 : index
    %6 = vector.load %arg7[%c0_4, %c0_5] : memref<1x128xf32, #tpu.memory_space<vmem>>, vector<1x128xf32>
    %7 = vector.broadcast %6 : vector<1x128xf32> to vector<8x128xf32>
    %8 = arith.addf %5, %7 : vector<8x128xf32>
    %cst_6 = arith.constant 5.000000e-01 : f32
    %9 = vector.broadcast %cst_6 : f32 to vector<8x128xf32>
    %10 = arith.mulf %9, %8 : vector<8x128xf32>
    %cst_7 = arith.constant 4.471500e-02 : f32
    %11 = vector.broadcast %cst_7 : f32 to vector<8x128xf32>
    %12 = arith.mulf %11, %8 : vector<8x128xf32>
    %13 = arith.mulf %12, %8 : vector<8x128xf32>
    %14 = arith.mulf %13, %8 : vector<8x128xf32>
    %15 = arith.addf %8, %14 : vector<8x128xf32>
    %cst_8 = arith.constant 0.797884583 : f32
    %16 = vector.broadcast %cst_8 : f32 to vector<8x128xf32>
    %17 = arith.mulf %16, %15 : vector<8x128xf32>
    %18 = math.tanh %17 : vector<8x128xf32>
    %cst_9 = arith.constant 1.000000e+00 : f32
    %19 = vector.broadcast %cst_9 : f32 to vector<8x128xf32>
    %20 = arith.addf %19, %18 : vector<8x128xf32>
    %21 = arith.mulf %10, %20 : vector<8x128xf32>
    %c0_10 = arith.constant 0 : index
    %c0_11 = arith.constant 0 : index
    %22 = vector.load %arg13[%c0_10, %c0_11] : memref<8x32xf32, #tpu.memory_space<vmem>>, vector<8x32xf32>
    %23 = arith.truncf %21 : vector<8x128xf32> to vector<8x128xbf16>
    %c0_12 = arith.constant 0 : index
    %c0_13 = arith.constant 0 : index
    %24 = vector.load %arg8[%c0_12, %c0_13] : memref<128x32xbf16, #tpu.memory_space<vmem>>, vector<128x32xbf16>
    %cst_14 = arith.constant dense<0.000000e+00> : vector<8x32xf32>
    %25 = tpu.matmul %23, %24, %cst_14 {dimension_numbers = #tpu.dot_dimension_numbers<[1], [0], [0], [1], [0, 0, 1, 1], [], []>} : vector<8x128xbf16>, vector<128x32xbf16>, vector<8x32xf32> -> vector<8x32xf32>
    %26 = arith.addf %22, %25 : vector<8x32xf32>
    %c0_15 = arith.constant 0 : index
    %c0_16 = arith.constant 0 : index
    %27 = vector.load %arg13[%c0_15, %c0_16] : memref<8x32xf32, #tpu.memory_space<vmem>>, vector<8x32xf32>
    tpu.vector_store %arg13[%c0_15, %c0_16], %26 {strides = array<i32>} : memref<8x32xf32, #tpu.memory_space<vmem>>, vector<8x32xf32>,
    %c0_i32_17 = arith.constant 0 : i32
    %28 = arith.cmpi eq, %arg2, %c0_i32_17 : i32
    %29 = arith.extui %28 : i1 to i32
    %c0_i32_18 = arith.constant 0 : i32
    %30 = arith.cmpi ne, %29, %c0_i32_18 : i32
    scf.if %30 {
      %c0_19 = arith.constant 0 : index
      %c0_20 = arith.constant 0 : index
      %31 = vector.load %arg13[%c0_19, %c0_20] : memref<8x32xf32, #tpu.memory_space<vmem>>, vector<8x32xf32>
      %c0_21 = arith.constant 0 : index
      %c0_22 = arith.constant 0 : index
      %32 = vector.load %arg9[%c0_21, %c0_22] : memref<1x32xf32, #tpu.memory_space<vmem>>, vector<1x32xf32>
      %33 = vector.broadcast %32 : vector<1x32xf32> to vector<8x32xf32>
      %34 = arith.addf %31, %33 : vector<8x32xf32>
      %c0_23 = arith.constant 0 : index
      %c0_24 = arith.constant 0 : index
      %c0_25 = arith.constant 0 : index
      %35 = vector.load %arg3[%c0_23, %c0_24, %c0_25] : memref<1x8x32xf32, #tpu.memory_space<vmem>>, vector<1x8x32xf32>
      %36 = vector.shape_cast %35 : vector<1x8x32xf32> to vector<8x32xf32>
      %37 = arith.addf %36, %34 : vector<8x32xf32>
      %c0_26 = arith.constant 0 : index
      %c0_27 = arith.constant 0 : index
      %c0_28 = arith.constant 0 : index
      %38 = vector.load %arg10[%c0_26, %c0_27, %c0_28] : memref<1x1x32xf32, #tpu.memory_space<vmem>>, vector<1x1x32xf32>
      %39 = vector.shape_cast %38 : vector<1x1x32xf32> to vector<1x32xf32>
      %40 = vector.broadcast %39 : vector<1x32xf32> to vector<8x32xf32>
      %41 = arith.mulf %40, %37 : vector<8x32xf32>
      %c0_29 = arith.constant 0 : index
      %c0_30 = arith.constant 0 : index
      %c0_31 = arith.constant 0 : index
      %42 = vector.load %arg11[%c0_29, %c0_30, %c0_31] : memref<1x1x32xf32, #tpu.memory_space<vmem>>, vector<1x1x32xf32>
      %43 = vector.shape_cast %42 : vector<1x1x32xf32> to vector<1x32xf32>
      %44 = vector.broadcast %43 : vector<1x32xf32> to vector<8x32xf32>
      %45 = arith.addf %41, %44 : vector<8x32xf32>
      %c0_32 = arith.constant 0 : index
      %c0_33 = arith.constant 0 : index
      %c0_34 = arith.constant 0 : index
      %46 = vector.load %arg12[%c0_32, %c0_33, %c0_34] : memref<1x8x32xf32, #tpu.memory_space<vmem>>, vector<1x8x32xf32>
      %47 = vector.shape_cast %46 : vector<1x8x32xf32> to vector<8x32xf32>
      %48 = vector.shape_cast %45 : vector<8x32xf32> to vector<1x8x32xf32>
      tpu.vector_store %arg12[%c0_32, %c0_33, %c0_34], %48 {strides = array<i32>} : memref<1x8x32xf32, #tpu.memory_space<vmem>>, vector<1x8x32xf32>,
    } else {
    }
    return
  }
  func.func @transform_0(%arg0: i32, %arg1: i32, %arg2: i32) -> (i32, i32, i32) {
    %c0_i32 = arith.constant 0 : i32
    %c0_i32_0 = arith.constant 0 : i32
    return %arg0, %arg1, %c0_i32 : i32, i32, i32
  }
  func.func @transform_1(%arg0: i32, %arg1: i32, %arg2: i32) -> (i32, i32) {
    %c0_i32 = arith.constant 0 : i32
    %c0_i32_0 = arith.constant 0 : i32
    %c0_i32_1 = arith.constant 0 : i32
    return %c0_i32, %c0_i32_0 : i32, i32
  }
  func.func @transform_2(%arg0: i32, %arg1: i32, %arg2: i32) -> (i32, i32) {
    %c0_i32 = arith.constant 0 : i32
    %c0_i32_0 = arith.constant 0 : i32
    %c0_i32_1 = arith.constant 0 : i32
    return %c0_i32, %c0_i32_0 : i32, i32
  }
  func.func @transform_3(%arg0: i32, %arg1: i32, %arg2: i32) -> (i32, i32) {
    %c0_i32 = arith.constant 0 : i32
    %c0_i32_0 = arith.constant 0 : i32
    return %c0_i32, %arg2 : i32, i32
  }
  func.func @transform_4(%arg0: i32, %arg1: i32, %arg2: i32) -> (i32, i32) {
    %c0_i32 = arith.constant 0 : i32
    %c0_i32_0 = arith.constant 0 : i32
    return %c0_i32, %arg2 : i32, i32
  }
  func.func @transform_5(%arg0: i32, %arg1: i32, %arg2: i32) -> (i32, i32) {
    %c0_i32 = arith.constant 0 : i32
    %c0_i32_0 = arith.constant 0 : i32
    return %arg2, %c0_i32 : i32, i32
  }
  func.func @transform_6(%arg0: i32, %arg1: i32, %arg2: i32) -> (i32, i32) {
    %c0_i32 = arith.constant 0 : i32
    %c0_i32_0 = arith.constant 0 : i32
    %c0_i32_1 = arith.constant 0 : i32
    return %c0_i32, %c0_i32_0 : i32, i32
  }
  func.func @transform_7(%arg0: i32, %arg1: i32, %arg2: i32) -> (i32, i32, i32) {
    %c0_i32 = arith.constant 0 : i32
    %c0_i32_0 = arith.constant 0 : i32
    %c0_i32_1 = arith.constant 0 : i32
    return %arg0, %c0_i32, %c0_i32_0 : i32, i32, i32
  }
  func.func @transform_8(%arg0: i32, %arg1: i32, %arg2: i32) -> (i32, i32, i32) {
    %c0_i32 = arith.constant 0 : i32
    %c0_i32_0 = arith.constant 0 : i32
    %c0_i32_1 = arith.constant 0 : i32
    return %arg0, %c0_i32, %c0_i32_0 : i32, i32, i32
  }
  func.func @transform_9(%arg0: i32, %arg1: i32, %arg2: i32) -> (i32, i32, i32) {
    %c0_i32 = arith.constant 0 : i32
    %c0_i32_0 = arith.constant 0 : i32
    return %arg0, %arg1, %c0_i32 : i32, i32, i32
  }
}

</mosaic_0001>

<bundles_post_ra>
// kernel: gpt2_condition_block.3
= control target key start
LH: loop header
LB: loop body
LE: loop exit
PB: predicated region body
PF: predicated region fallthrough
CT: control target
= control target key end

     0   :  { %s763_s21 = smov 0   ;;  %s765_s22 = smov 0   ;;  %s860_s0 = inlined_call_operand.vmem [shape: f32[2,8,32], index: 0, kind: input, shape index: {}]   ;;  %s861_s1 = inlined_call_operand.vmem [shape: f32[1,32], index: 1, kind: input, shape index: {}]   ;;  %s862_s2 = inlined_call_operand.vmem [shape: f32[1,32], index: 2, kind: input, shape index: {}]   ;;  %s863_s3 = inlined_call_operand.vmem [shape: bf16[3,32,32], index: 3, kind: input, shape index: {}]   ;;  %s864_s4 = inlined_call_operand.vmem [shape: f32[3,1,32], index: 4, kind: input, shape index: {}]   ;;  %s865_s5 = inlined_call_operand.vmem [shape: f32[2,3,1,32], index: 5, kind: input, shape index: {}]   ;;  %s866_s6 = inlined_call_operand.vmem [shape: bf16[2,3,8,32], index: 6, kind: output, shape index: {}]  }
   0x1   :  { %s767_s23 = smov 0   ;;  %s769_s24 = smov 0  }
   0x2   :  { %s771_s25 = smov 0  }
   0x3 LB: > { %s28_s26 = sadd.s32 1, %s716_s23  ;;  %s35_s27 = sadd.s32 1, %s720_s24  ;;  %s724_s25 = sphi %s771_s25, %s16_s25   ;;  %s720_s24 = sphi %s769_s24, %s870_s24   ;;  %s716_s23 = sphi %s767_s23, %s869_s23   ;;  %s712_s22 = sphi %s765_s22, %s868_s22   ;;  %s708_s21 = sphi %s763_s21, %s867_s21  }
   0x4   : > { %p29_p0 = scmp.ge.s32.totalorder %s28_s26, 3  ;;  %p612_p1 = scmp.ge.s32.totalorder %s724_s25, 1 }
   0x5   : > { %p271_p2 = scmp.lt.s32.totalorder %s724_s25, 7 }
   0x6   : > { %s872_s26 = smov (%p29_p0, %s28_s26), 0  ;;  %s874_s27 = smov (!%p29_p0, %s35_s27), %s720_s24 }
   0x7   : > { %p272_p3 = pnand %p612_p1, %p271_p2  ;;  %p37_p4 = scmp.ge.s32.totalorder %s874_s27, 2 }
   0x8   : > { %p324_p5 = scmp.lt.s32.totalorder (!%p272_p3), %s712_s22, 1  ;;  %p331_p6 = scmp.lt.s32.totalorder (!%p272_p3), %s708_s21, 2 }
   0x9   : > { %s876_s27 = smov (%p37_p4, %s874_s27), 0  ;;  %275 = sbr.rel (%p272_p3) target bundleno = 565 (0x235), region = 44 }
   0xa   : > { %p617_p7 = scmp.ne.s32.totalorder (!%p272_p3), %s708_s21, 0 }
  0x10   : > { %s878_s22 = smov (!%p324_p5, %s712_s22), 1  ;;  %vm365_vm0 = vcmask (!%p617_p7), 261120   ;;  %v618_v11 = vld [vmem:[%s861_s1] ss:$0 sm:$0xff] (!%p617_p7)  ;;  %vm395_vm1 = vcmask (!%p617_p7), 257024  }
  0x11   : > { %s797_s28 = scalar_select %p331_p6, %s708_s21, 2 }
  0x12   : > { %s613_s29 = sshll.u32 %s878_s22, 3  ;;  %s639_s30 = smul.u32 3, %s878_s22  ;;  %v619_v13 = vld [vmem:[%s862_s2] ss:$0 sm:$0xff] (!%p617_p7) }
  0x13   : > { %s330_s9 = scalar_lea.vmem %s860_s0, %s613_s29  ;;  %s627_s10 = sshll.u32 %s797_s28, 4 }
  0x14   : > { %s806_s13 = scalar_lea.vmem %s863_s3, %s627_s10  ;;  %s338_s16 = scalar_lea.vmem %s864_s4, %s797_s28  ;;  %v362_v0 = vld [vmem:[%s330_s9] sm:$0xff] (!%p617_p7) }
  0x15   : > { %s813_s17 = sadd.s32 %s639_s30, %s797_s28  ;;  %361 = sbr.rel (%p617_p7) target bundleno = 337 (0x151), region = 48  ;;  %v366_v1 = vsel (!%p617_p7), %vm365_vm0, %v362_v0, 0.0 }
  0x16   : > { %s345_s20 = scalar_lea.vmem %s865_s5, %s813_s17  ;;  %s616_s22 = sshll.u32 %s813_s17, 2  ;;  %367 = vadd.xlane.f32.xlu0 (!%p617_p7), %v366_v1 }
  0x17   : > { %s823_s8 = scalar_lea.vmem %s866_s6, %s616_s22 }
  0xa3   : > { %v368_v2 = vpop.xlane.xlu0 %367 }
  0xa4   : > { %v370_v3 = vmul.f32 0.03125, %v368_v2 }
  0xa6   : > { %v371_v4 = vsub.f32 %v362_v0, %v370_v3 }
  0xa8   : > { %v372_v5 = vmul.f32 %v371_v4, %v371_v4 }
  0xaa   : > { %v373_v6 = vsel %vm365_vm0, %v372_v5, 0.0 }
  0xab   : > { %374 = vadd.xlane.f32.xlu0 %v373_v6 }
 0x138   : > { %v375_v7 = vpop.xlane.xlu0 %374 }
 0x139   : > { %v376_v8 = vmul.f32 0.03125, %v375_v7 }
 0x13b   : > { %v377_v9 = vadd.f32 1e-05, %v376_v8 }
 0x13d   : > { %682 = vrsqrt.f32 %v377_v9 }
 0x147   : > { %v683_v10 = vpop.eup %682 }
 0x148   : > { %v379_v12 = vmul.f32 %v683_v10, %v371_v4 }
 0x14a   : > { %v386_v14 = vmul.f32 %v618_v11, %v379_v12 }
 0x14c   : > { %v393_v15 = vadd.f32 %v619_v13, %v386_v14 }
 0x14e   : > { %v394_v16 = vpack.c.bf16 %v393_v15, %v393_v15 }
 0x150   : > { %396 = vst.msk [vmem:[#allocation2] sm:$0xf] %vm395_vm1, %v394_v16 }
 0x151 PF: > { %v684_v17 = vld [vmem:[%s806_s13] sm:$0xff]   ;;  %v726_v18 = vmov 0.0   ;;  %v685_v19 = vld [vmem:[%s806_s13 + $0x8] sm:$0xff]   ;;  %vm727_vm2 = vmmov 0   ;;  %vm421_vm3 = vcmask 261120   ;;  %vm474_vm4 = vcmask 257024  }
 0x152   : > { %631 = vmatprep.subr.bf16.mxu0 %v726_v18  ;;  %635 = vmatprep.mubr.msk.bf16.mxu0 %vm727_vm2, %v726_v18  ;;  %v620_v21 = vld [vmem:[%s338_s16] ss:$0 sm:$0xff] }
 0x153   : > { %632 = vmatpush3.bf16.msra.mxu0 %v684_v17  ;;  %v624_v23 = vld [vmem:[%s345_s20] ss:$0 sm:$0xff] }
 0x154   : > { %633 = vmatprep.subr.bf16.mxu0 %v726_v18 }
 0x157   : > { %634 = vmatpush3.bf16.msra.mxu0 %v685_v19  ;;  %v397_v20 = vld [vmem:[#allocation2] sm:$0xf] }
 0x15a   : > { %636 = vmatmul.mubr.msk.bf16.vlgmr.msra.gmra.mrb[0].mxu0 %vm421_vm3, %v397_v20 }
 0x22d   : > { %v459_v22 = vpop.f32.mrb[0].mxu0 }
 0x22e   : > { %v460_v24 = vadd.f32 %v620_v21, %v459_v22  ;;  %v637_v25 = vpop.f32.mrb[1].mxu0 }
 0x22f   : > { %v462_v26 = vpop.f32.mrb[2].mxu0 }
 0x230   : > { %v472_v27 = vadd.f32 %v624_v23, %v460_v24  ;;  %v638_v28 = vpop.f32.mrb[3].mxu0 }
 0x232   : > { %v473_v29 = vpack.c.bf16 %v472_v27, %v472_v27 }
 0x234   : > { %475 = vst.msk [vmem:[%s823_s8] sm:$0xf] %vm474_vm4, %v473_v29 }
 0x235 PF: > { %s16_s25 = sadd.s32 1, %s724_s25   ;;  %s867_s21 = smov %s716_s23 }
 0x236   : > { %p13_p8 = scmp.ge.s32.totalorder %s16_s25, 8   ;;  %s868_s22 = smov %s720_s24 }
 0x237   : > { %s869_s23 = smov %s872_s26  ;;  %s870_s24 = smov %s876_s27 }
 0x238   :  { %15 = sbr.rel (!%p13_p8) target bundleno = 3 (0x3), region = 87 }

// kernel: gpt2_condition_block.5
= control target key start
LH: loop header
LB: loop body
LE: loop exit
PB: predicated region body
PF: predicated region fallthrough
CT: control target
= control target key end

     0   :  { %s1298_s0 = inlined_call_operand.vmem [shape: f32[2,8,32], index: 0, kind: input, shape index: {}]   ;;  %s1299_s1 = inlined_call_operand.vmem [shape: f32[1,32], index: 1, kind: input, shape index: {}]   ;;  %s1300_s2 = inlined_call_operand.vmem [shape: f32[1,32], index: 2, kind: input, shape index: {}]   ;;  %s1301_s3 = inlined_call_operand.vmem [shape: bf16[32,128], index: 3, kind: input, shape index: {}]   ;;  %s1302_s4 = inlined_call_operand.vmem [shape: f32[1,128], index: 4, kind: input, shape index: {}]   ;;  %s1303_s5 = inlined_call_operand.vmem [shape: bf16[128,32], index: 5, kind: input, shape index: {}]   ;;  %s1304_s6 = inlined_call_operand.vmem [shape: f32[1,32], index: 6, kind: input, shape index: {}]   ;;  %s1305_s7 = inlined_call_operand.vmem [shape: f32[2,1,32], index: 7, kind: input, shape index: {}]   ;;  %s1306_s8 = inlined_call_operand.vmem [shape: f32[2,1,32], index: 8, kind: input, shape index: {}]   ;;  %s1307_s9 = inlined_call_operand.hbm [shape: f32[2,8,32], index: 9, kind: output, shape index: {}]  }
   0x1   :  { %1308 = sst [smem:[#allocation7_spill]] %s1298_s0 }
   0x2   :  { %1309 = sst [smem:[#allocation8_spill]] %s1299_s1 }
   0x3   :  { %1310 = sst [smem:[#allocation9_spill]] %s1300_s2 }
   0x4   :  { %14 = vsyncpa [#allocation5], 0 }
   0x5   :  { %16 = vsyncpa [#allocation5 + $0x1], 0  ;;  %s1122_s30 = smov 0   ;;  %s1124_s10 = smov 0  }
   0x6   :  { %s1126_s11 = smov 0   ;;  %s1128_s12 = smov 0  }
   0x7   :  { %s1130_s13 = smov 0   ;;  %s1132_s14 = smov 0  }
   0x8 LB: > { %s847_s15 = sadd.s32 4294967295, %s1067_s14   ;;  %s848_s16 = sadd.s32 4294967294, %s1067_s14   ;;  %s1067_s14 = sphi %s1132_s14, %s22_s14   ;;  %s1063_s13 = sphi %s1130_s13, %s1320_s13   ;;  %s1059_s12 = sphi %s1128_s12, %s1319_s12   ;;  %s1055_s11 = sphi %s1126_s11, %s1318_s11   ;;  %s1051_s10 = sphi %s1124_s10, %s1317_s10   ;;  %s1047_s30 = sphi %s1122_s30, %s1316_s30  }
   0x9   : > { %s41_s17 = sadd.s32 1, %s1063_s13  ;;  %s271_s18 = sadd.s32 1, %s1055_s11 }
   0xa   : > { %p43_p0 = scmp.ge.s32.totalorder %s41_s17, 2  ;;  %p281_p1 = scmp.ne.s32.totalorder %s1055_s11, %s1051_s10 }
   0xb   : > { %p282_p2 = scmp.eq.s32.totalorder %s847_s15, 1  ;;  %p287_p3 = scmp.ne.s32.totalorder %s1051_s10, %s1047_s30 }
   0xc   : > { %s1322_s17 = smov (%p43_p0, %s41_s17), 0  ;;  %p288_p5 = scmp.eq.s32.totalorder %s848_s16, 1 }
   0xd   : > { %p1162_p4 = por %p282_p2, %p281_p1  ;;  %s266_s20 = ssub.s32 %s1063_s13, %s1322_s17 }
   0xe   : > { %p854_p6 = scmp.ge.s32.totalorder %s1067_s14, 1  ;;  %p269_p7 = scmp.eq.s32.totalorder %s266_s20, 0 }
   0xf   : > { %p1169_p8 = por %p288_p5, %p287_p3  ;;  %p359_p9 = scmp.lt.s32.totalorder %s1067_s14, 3 }
  0x10   : > { %s1175_s22 = scalar_select %p269_p7, %s1055_s11, %s271_s18  }
  0x11   : > { %p360_p10 = pnand %p854_p6, %p359_p9 }
  0x12   : > { %p415_p11 = scmp.lt.s32.totalorder (!%p360_p10), %s1059_s12, 1  ;;  %vm446_vm0 = vcmask (!%p360_p10), 261120   ;;  %s1313_s0 = sld [smem:[#allocation7_spill]] (!%p360_p10)  ;;  %v975_v7 = vld [vmem:[%s1301_s3] sm:$0xff] (!%p360_p10)   ;;  %v1069_v8 = vmov (!%p360_p10), 0.0   ;;  %v976_v9 = vld [vmem:[%s1301_s3 + $0x8] sm:$0xff] (!%p360_p10)  }
  0x13   : > { %363 = sbr.rel (%p360_p10) target bundleno = 839 (0x347), region = 56  ;;  %890 = vmatprep.subr.bf16.mxu0 (!%p360_p10), %v1069_v8  ;;  %447 = vst.msk [vmem:[#allocation2] sm:$0xff] (!%p360_p10), %vm446_vm0, %v1069_v8  ;;  %898 = vmatprep.subr.bf16.mxu1 (!%p360_p10), %v1069_v8  ;;  %vm1070_vm1 = vmmov (!%p360_p10), 0   ;;  %v977_v10 = vld [vmem:[%s1303_s5] sm:$0xff] (!%p360_p10)   ;;  %s1314_s1 = sld [smem:[#allocation8_spill]] (!%p360_p10)  ;;  %vm480_vm2 = vcmask (!%p360_p10), 257024  }
  0x14   : > { %891 = vmatpush3.bf16.msra.mxu0 (!%p360_p10), %v975_v7  ;;  %894 = vmatprep.mubr.msk.bf16.mxu0 (!%p360_p10), %vm1070_vm1, %v1069_v8  ;;  %s1315_s2 = sld [smem:[#allocation9_spill]] (!%p360_p10)  ;;  %v978_v22 = vld [vmem:[%s1303_s5 + $0x8] sm:$0xff] (!%p360_p10)   ;;  %v979_v23 = vld [vmem:[%s1303_s5 + $0x10] sm:$0xff] (!%p360_p10)   ;;  %v980_v24 = vld [vmem:[%s1303_s5 + $0x18] sm:$0xff] (!%p360_p10)  }
  0x15   : > { %892 = vmatprep.subr.bf16.mxu0 (!%p360_p10), %v1069_v8  ;;  %914 = vmatprep.mubr.msk.bf16.mxu1 (!%p360_p10), %vm1070_vm1, %v1069_v8  ;;  %v981_v25 = vld [vmem:[%s1303_s5 + $0x20] sm:$0xff] (!%p360_p10)   ;;  %v982_v26 = vld [vmem:[%s1303_s5 + $0x28] sm:$0xff] (!%p360_p10)   ;;  %v983_v27 = vld [vmem:[%s1303_s5 + $0x30] sm:$0xff] (!%p360_p10)  }
  0x16   : > { %899 = vmatpush3.bf16.msra.mxu1 (!%p360_p10), %v977_v10  ;;  %v984_v28 = vld [vmem:[%s1303_s5 + $0x38] sm:$0xff] (!%p360_p10)   ;;  %v859_v29 = vld [vmem:[%s1302_s4] ss:$0 sm:$0xff] (!%p360_p10) }
  0x17   : > { %900 = vmatprep.subr.bf16.mxu1 (!%p360_p10), %v1069_v8  ;;  %v871_v51 = vld [vmem:[%s1304_s6] ss:$0 sm:$0xff] (!%p360_p10) }
  0x18   : > { %893 = vmatpush3.bf16.msra.mxu0 (!%p360_p10), %v976_v9 }
  0x19   : > { %v857_v15 = vld [vmem:[%s1314_s1] ss:$0 sm:$0xff] (!%p360_p10) }
  0x1a   : > { %s1179_s23 = scalar_select %p415_p11, %s1059_s12, 1  ;;  %v858_v17 = vld [vmem:[%s1315_s2] ss:$0 sm:$0xff]  ;;  %901 = vmatpush3.bf16.msra.mxu1 %v978_v22 }
  0x1b   : > { %902 = vmatprep.subr.bf16.mxu1 %v1069_v8  ;;  %v559_v45 = vld [vmem:[#allocation2] sm:$0xff] }
  0x1c   : > { %s856_s24 = sshll.u32 %s1179_s23, 3  ;;  %s437_s15 = scalar_lea.vmem %s1305_s7, %s1179_s23 }
  0x1d   : > { %s421_s27 = scalar_lea.vmem %s1313_s0, %s856_s24  ;;  %s412_s24 = sand.u32 1, %s1051_s10   ;;  %v872_v54 = vld [vmem:[%s437_s15] ss:$0 sm:$0xff] }
  0x1e   : > { %v1185_v0 = vld [vmem:[%s421_s27] sm:$0xff]  ;;  %903 = vmatpush3.bf16.msra.mxu1 %v979_v23  ;;  %s855_s25 = sshll.u32 %s412_s24, 3  ;;  %s440_s20 = scalar_lea.vmem %s1306_s8, %s1179_s23 }
  0x1f   : > { %v451_v1 = vsel %vm446_vm0, %v1185_v0, 0.0  ;;  %904 = vmatprep.subr.bf16.mxu1 %v1069_v8  ;;  %v873_v56 = vld [vmem:[%s440_s20] ss:$0 sm:$0xff]  ;;  %s875_s0 = sshll.u32 %s1059_s12, 7  ;;  %s414_s1 = scalar_lea.vmem [#allocation4], %s855_s25 }
  0x20   : > { %452 = vadd.xlane.f32.xlu0 %v451_v1  ;;  %s713_s2 = sshll.u32 %s414_s1, 4  ;;  %s1250_s28 = scalar_lea.hbm %s1307_s9, %s875_s0  ;;  %s1252_s2 = int_to_ptr.vmem [resolvable:$true] %s713_s2 }
  0x21   : > { %s699_s23 = scalar_lea.sflag [#allocation5], %s412_s24  ;;  %s989_s29 = scalar_lea.vmem %s1252_s2, 128 }
  0x22   : > { %905 = vmatpush3.bf16.msra.mxu1 %v980_v24  ;;  %p990_p12 = scmp.ne.s32.totalorder %s1252_s2, %s989_s29  ;;  %s1071_s12 = smov [#allocation4]  }
  0x23   : > { %906 = vmatprep.subr.bf16.mxu1 %v1069_v8  ;;  %s993_s25 = sshll.u32 %s1071_s12, 4  ;;  %s994_s25 = int_to_ptr.vmem [resolvable:$false] %s993_s25 }
  0x24   : > { %p991_p13 = pnand %p990_p12, %p1162_p4  ;;  %s995_s15 = scalar_lea.vmem %s994_s25, 256 }
  0x25   : > { %p996_p1 = scmp.lt.s32.totalorder %s1252_s2, %s994_s25  ;;  %p997_p2 = scmp.lt.s32.totalorder %s995_s15, %s989_s29 }
  0x26   : > { %907 = vmatpush3.bf16.msra.mxu1 %v981_v25  ;;  %p992_p0 = pneg %p991_p13 }
  0x27   : > { %908 = vmatprep.subr.bf16.mxu1 %v1069_v8  ;;  %p998_p3 = por %p997_p2, %p996_p1 }
  0x29   : > { %p999_p5 = pnand %p998_p3, %p992_p0 }
  0x2a   : > { %909 = vmatpush3.bf16.msra.mxu1 %v982_v26 }
  0x2b   : > { %910 = vmatprep.subr.bf16.mxu1 %v1069_v8 }
  0x2e   : > { %911 = vmatpush3.bf16.msra.mxu1 %v983_v27 }
  0x2f   : > { %912 = vmatprep.subr.bf16.mxu1 %v1069_v8 }
  0x32   : > { %913 = vmatpush3.bf16.msra.mxu1 %v984_v28 }
  0xad   : > { %v453_v2 = vpop.xlane.xlu0 %452 }
  0xae   : > { %v455_v3 = vmul.f32 0.03125, %v453_v2 }
  0xb0   : > { %v456_v4 = vsub.f32 %v1185_v0, %v455_v3 }
  0xb2   : > { %v457_v5 = vmul.f32 %v456_v4, %v456_v4 }
  0xb4   : > { %v458_v6 = vsel %vm446_vm0, %v457_v5, 0.0 }
  0xb5   : > { %459 = vadd.xlane.f32.xlu0 %v458_v6 }
 0x142   : > { %v460_v11 = vpop.xlane.xlu0 %459 }
 0x143   : > { %v461_v12 = vmul.f32 0.03125, %v460_v11 }
 0x145   : > { %v462_v13 = vadd.f32 1e-05, %v461_v12 }
 0x147   : > { %985 = vrsqrt.f32 %v462_v13 }
 0x151   : > { %v986_v14 = vpop.eup %985 }
 0x152   : > { %v464_v16 = vmul.f32 %v986_v14, %v456_v4 }
 0x154   : > { %v471_v18 = vmul.f32 %v857_v15, %v464_v16 }
 0x156   : > { %v478_v19 = vadd.f32 %v858_v17, %v471_v18 }
 0x158   : > { %v479_v20 = vpack.c.bf16 %v478_v19, %v478_v19 }
 0x15a   : > { %481 = vst.msk [vmem:[#allocation3] sm:$0xf] %vm480_vm2, %v479_v20 }
 0x161   : > { %v482_v21 = vld [vmem:[#allocation3] sm:$0xf] }
 0x162   : > { %895 = vmatmul.mubr.msk.bf16.vlgmr.msra.gmra.mrb[0].mxu0 %vm446_vm0, %v482_v21 }
 0x235   : > { %v544_v30 = vpop.f32.mrb[0].mxu0 }
 0x236   : > { %v545_v31 = vadd.f32 %v859_v29, %v544_v30  ;;  %v896_v32 = vpop.f32.mrb[1].mxu0 }
 0x237   : > { %v547_v33 = vpop.f32.mrb[2].mxu0 }
 0x238   : > { %v551_v34 = vmul.f32 0.044715, %v545_v31  ;;  %v897_v35 = vpop.f32.mrb[3].mxu0  ;;  %v550_v41 = vmul.f32 0.5, %v545_v31 }
 0x23a   : > { %v552_v36 = vmul.f32 %v551_v34, %v545_v31 }
 0x23c   : > { %v553_v37 = vmul.f32 %v552_v36, %v545_v31 }
 0x23e   : > { %v554_v38 = vadd.f32 %v553_v37, %v545_v31 }
 0x240   : > { %v555_v39 = vmul.f32 0.7978846, %v554_v38 }
 0x242   : > { %987 = vtanh.f32 %v555_v39 }
 0x24c   : > { %v988_v40 = vpop.eup %987 }
 0x24d   : > { %v557_v42 = vadd.f32 1.0, %v988_v40 }
 0x24f   : > { %v558_v43 = vmul.f32 %v557_v42, %v550_v41 }
 0x251   : > { %v560_v44 = vpack.c.bf16 %v558_v43, %v558_v43 }
 0x253   : > { %915 = vmatmul.mubr.bf16.vlgmr.msra.gmra.mrb[0].mxu1 %v560_v44 }
 0x326   : > { %v659_v46 = vpop.f32.mrb[0].mxu1 }
 0x327   : > { %v665_v47 = vadd.f32 %v659_v46, %v559_v45  ;;  %v916_v48 = vpop.f32.mrb[1].mxu1 }
 0x328   : > { %v662_v49 = vpop.f32.mrb[2].mxu1 }
 0x329   : > { %666 = vst.msk [vmem:[#allocation2] sm:$0xff] %vm446_vm0, %v665_v47  ;;  %v917_v50 = vpop.f32.mrb[3].mxu1 }
 0x330   : > { %v670_v52 = vld [vmem:[#allocation2] sm:$0xff] }
 0x331   : > { %v678_v53 = vadd.f32 %v871_v51, %v670_v52 }
 0x333   : > { %v680_v55 = vadd.f32 %v678_v53, %v1185_v0 }
 0x335   : > { %v688_v57 = vmul.f32 %v872_v54, %v680_v55 }
 0x337   : > { %v696_v58 = vadd.f32 %v873_v56, %v688_v57 }
 0x339   : > { %697 = vst.msk [vmem:[%s414_s1] sm:$0xff] %vm446_vm0, %v696_v58 }
 0x33a   : > { %1002 = shalt.err (!%p999_p5)
}
 0x33b   : > { %s1003_s0 = scalar_lea.hbm %s1250_s28, 128  ;;  %s1007_s16 = scalar_lea.hbm %s1307_s9, 256 }
 0x33c   : > { %p1004_p6 = scmp.ne.s32.totalorder %s1250_s28, %s1003_s0  ;;  %p1008_p10 = scmp.lt.u32.totalorder %s1250_s28, %s1307_s9 }
 0x33d   : > { %p1009_p11 = scmp.lt.u32.totalorder %s1007_s16, %s1003_s0  ;;  %p1011_p13 = scmp.lt.u32.totalorder %s1003_s0, %s1250_s28 }
 0x33e   : > { %p1005_p7 = pnand %p1004_p6, %p1162_p4 }
 0x33f   : > { %p1010_p12 = por %p1009_p11, %p1008_p10 }
 0x340   : > { %p1006_p9 = pneg %p1005_p7 }
 0x341   : > { %p1012_p0 = por %p1011_p13, %p1010_p12 }
 0x343   : > { %p1013_p1 = pnand %p1012_p0, %p1006_p9 }
 0x345   : > { %1016 = shalt.err (!%p1013_p1)
}
 0x346   : > { %918 = dma.vmem_to_hbm [thread:$0]  (%p1162_p4), %s1252_s2, 128, %s1250_s28, %s699_s23  }
 0x347 PF: > { %p924_p2 = scmp.ge.s32.totalorder %s1067_s14, 2  ;;  %s725_s26 = sand.u32 1, %s1047_s30  }
 0x348   : > { %s726_s27 = scalar_lea.sflag [#allocation5], %s725_s26 }
 0x349   : > { %p921_p3 = pnand %p924_p2, %p1169_p8 }
 0x34b   : > { %1042 = dma.done.wait (!%p921_p3), %s726_s27, 128  }
 0x34c   : > { %1044 = vsyncadd (!%p921_p3), %s726_s27, 4294967168  ;;  %s22_s14 = sadd.s32 1, %s1067_s14   ;;  %s1316_s30 = smov %s1051_s10 }
 0x34d   : > { %p19_p5 = scmp.ge.s32.totalorder %s22_s14, 4   ;;  %s1317_s10 = smov %s1055_s11 }
 0x34e   : > { %s1318_s11 = smov %s1175_s22  ;;  %s1319_s12 = smov %s1063_s13 }
 0x34f   : > { %s1320_s13 = smov %s1322_s17  ;;  %21 = sbr.rel (!%p19_p5) target bundleno = 8 (0x8), region = 114 }
 0x356   :  { %731 = vsyncpa [#allocation5], 1 }
 0x357   :  { %733 = vsyncpa [#allocation5 + $0x1], 1 }

// kernel: gpt2_condition_block.4
= control target key start
LH: loop header
LB: loop body
LE: loop exit
PB: predicated region body
PF: predicated region fallthrough
CT: control target
= control target key end

     0   :  { %s1627_s27 = smov 0   ;;  %s1629_s28 = smov 0   ;;  %s1834_s0 = inlined_call_operand.vmem [shape: bf16[2,3,8,32], index: 0, kind: input, shape index: {}, may-alias: {0,1,2}]   ;;  %s1835_s1 = inlined_call_operand.vmem [shape: bf16[2,3,8,32], index: 1, kind: input, shape index: {}, may-alias: {0,1,2}]   ;;  %s1836_s2 = inlined_call_operand.vmem [shape: bf16[2,3,8,32], index: 2, kind: input, shape index: {}, may-alias: {0,1,2}]   ;;  %s1837_s3 = inlined_call_operand.vmem [shape: f32[2,8,32], index: 3, kind: input, shape index: {}]   ;;  %s1838_s4 = inlined_call_operand.vmem [shape: bf16[32,32], index: 4, kind: input, shape index: {}]   ;;  %s1839_s5 = inlined_call_operand.vmem [shape: f32[1,32], index: 5, kind: input, shape index: {}]   ;;  %s1840_s6 = inlined_call_operand.vmem [shape: f32[2,1,32], index: 6, kind: input, shape index: {}]   ;;  %s1841_s7 = inlined_call_operand.vmem [shape: f32[2,1,32], index: 7, kind: input, shape index: {}]   ;;  %s1842_s8 = inlined_call_operand.vmem [shape: f32[2,8,32], index: 8, kind: output, shape index: {}]  }
   0x1   :  { %s1631_s29 = smov 0  }
   0x2 LB: > { %s37_s30 = sadd.s32 1, %s1566_s28  ;;  %p1381_p0 = scmp.ge.s32.totalorder %s1570_s29, 1  ;;  %s1570_s29 = sphi %s1631_s29, %s18_s29   ;;  %s1566_s28 = sphi %s1629_s28, %s1844_s28   ;;  %s1562_s27 = sphi %s1627_s27, %s1843_s27  }
   0x3   : > { %p39_p1 = scmp.ge.s32.totalorder %s37_s30, 2  ;;  %p366_p2 = scmp.lt.s32.totalorder %s1570_s29, 3 }
   0x5   : > { %s1846_s30 = smov (%p39_p1, %s37_s30), 0  ;;  %p367_p3 = pnand %p1381_p0, %p366_p2 }
   0x6   : > { %p440_p4 = scmp.lt.s32.totalorder (!%p367_p3), %s1562_s27, 1  ;;  %v1572_v0 = vmov (!%p367_p3), 0.0   ;;  %vm1573_vm0 = vmmov (!%p367_p3), 0   ;;  %vm530_vm1 = vcmask (!%p367_p3), 64512   ;;  %vm499_vm2 = vcmask (!%p367_p3), 7168   ;;  %s1576_s16 = smov (!%p367_p3), 120  }
   0x7   : > { %370 = sbr.rel (%p367_p3) target bundleno = 1636 (0x664), region = 52  ;;  %1427 = vmatprep.subr.bf16.mxu0 (!%p367_p3), %v1572_v0  ;;  %1429 = vmatprep.mubr.msk.bf16.mxu0 (!%p367_p3), %vm1573_vm0, %v1572_v0  ;;  %v1574_v4 = vmov (!%p367_p3), -inf   ;;  %504 = vst.msk [vmem:[#allocation3] sm:$0xff] (!%p367_p3), %vm499_vm2, %v1572_v0  ;;  %505 = vst.msk [vmem:[#allocation3 + $0x8] sm:$0xff] (!%p367_p3), %vm499_vm2, %v1572_v0  ;;  %v521_v5 = vlaneseq (!%p367_p3)  ;;  %v1575_v15 = vmov (!%p367_p3), 0   ;;  %s1577_s17 = smov (!%p367_p3), 112  }
   0x8   : > { %1433 = vmatprep.subr.bf16.mxu1 (!%p367_p3), %v1572_v0  ;;  %1435 = vmatprep.mubr.msk.bf16.mxu1 (!%p367_p3), %vm1573_vm0, %v1572_v0  ;;  %500 = vst.msk [vmem:[#allocation2] sm:$0xff] (!%p367_p3), %vm499_vm2, %v1574_v4  ;;  %501 = vst.msk [vmem:[#allocation2 + $0x8] sm:$0xff] (!%p367_p3), %vm499_vm2, %v1574_v4  ;;  %s1578_s18 = smov (!%p367_p3), 104   ;;  %vm614_vm4 = vcmask (!%p367_p3), 1043456   ;;  %vm508_vm5 = vcmask (!%p367_p3), 261120   ;;  %s1579_s22 = smov (!%p367_p3), 8  }
   0x9   : > { %502 = vst.msk [vmem:[#allocation2 + $0x10] sm:$0xff] (!%p367_p3), %vm499_vm2, %v1574_v4  ;;  %503 = vst.msk [vmem:[#allocation2 + $0x18] sm:$0xff] (!%p367_p3), %vm499_vm2, %v1574_v4  ;;  %v1681_v6 = vshrl.u32 (!%p367_p3), %v521_v5, 7  ;;  %v1683_v7 = vand.u32 (!%p367_p3), 127, %v521_v5  ;;  %1518 = vset.pattern.permute.xlu0 (!%p367_p3), %v1575_v15  ;;  %1519 = vset.pattern.permute.xlu1 (!%p367_p3), %v1575_v15  ;;  %s1580_s23 = smov (!%p367_p3), 16   ;;  %s1581_s24 = smov (!%p367_p3), 24  }
   0xa   : > { %506 = vst.msk [vmem:[#allocation3 + $0x10] sm:$0xff] (!%p367_p3), %vm499_vm2, %v1572_v0  ;;  %507 = vst.msk [vmem:[#allocation3 + $0x18] sm:$0xff] (!%p367_p3), %vm499_vm2, %v1572_v0  ;;  %vm808_vm6 = vcmask (!%p367_p3), 130112   ;;  %vm949_vm7 = vcmask (!%p367_p3), 195712   ;;  %vm1090_vm8 = vcmask (!%p367_p3), 261312   ;;  %vm1129_vm9 = vcmask (!%p367_p3), 130048  }
   0xb   : > { %vm529_vm3 = vcmp.le.s32.totalorder (!%p367_p3), %v1683_v7, %v1681_v6  ;;  %509 = vst.msk [vmem:[#allocation4] sm:$0xff] (!%p367_p3), %vm508_vm5, %v1572_v0  ;;  %vm1131_vm10 = vcmask (!%p367_p3), 195584  }
   0xe   : > { %s1848_s27 = smov (!%p440_p4, %s1562_s27), 1 }
   0xf   : > { %s1654_s9 = smul.u32 12, %s1848_s27  ;;  %v1697_v18 = vld [vmem:[#allocation2] sm:$0xff]  ;;  %v1752_v63 = vld [vmem:[#allocation2 + $0x8] sm:$0xff]  ;;  %s1385_s11 = sshll.u32 %s1848_s27, 3 }
  0x10   : > { %v864_v5 = vld [vmem:[#allocation2 + $0x10] sm:$0xff]  ;;  %s480_s14 = scalar_lea.vmem %s1837_s3, %s1385_s11  ;;  %s483_s19 = scalar_lea.vmem %s1840_s6, %s1848_s27 }
  0x11   : > { %s1295_s12 = scalar_lea.vmem %s1835_s1, %s1654_s9  ;;  %s447_s15 = scalar_lea.vmem %s1834_s0, %s1654_s9 }
  0x12   : > { %v1387_v1 = vld [vmem:[%s1295_s12 + $0x4] sm:$0xf]  ;;  %v517_v3 = vld [vmem:[%s447_s15] sm:$0xf]  ;;  %s1300_s21 = scalar_lea.vmem %s1836_s2, %s1654_s9  ;;  %s493_s25 = scalar_lea.vmem %s1842_s8, %s1385_s11 }
  0x13   : > { %v535_v2 = vsel %vm530_vm1, %v1387_v1, 0  ;;  %v1392_v16 = vcombine.low %v1387_v1, %v1387_v1  ;;  %v1391_v17 = vcombine.low %v517_v3, %v517_v3  ;;  %v1711_v22 = vld [vmem:[%s1300_s21 + $0x8] sm:$0xf] }
  0x14   : > { %1428 = vmatpush3.bf16.xpose.msra.mxu0 %v535_v2  ;;  %v616_v23 = vsel %vm614_vm4, %v1711_v22, 0 }
  0x15   : > { %1445 = vmatprep.subr.bf16.mxu0 %v1572_v0  ;;  %669 = vrot.lane.b32.xlu1 %v1392_v16, %s1576_s16 }
  0x16   : > { %1434 = vmatpush3.bf16.msra.mxu1 %v616_v23 }
  0x17   : > { %1439 = vmatprep.subr.bf16.mxu1 %v1572_v0 }
  0x19   : > { %664 = vrot.lane.b32.xlu1 %v1391_v17, %s1576_s16 }
  0x1b   : > { %1430 = vmatmul.mubr.msk.bf16.vlgmr.msra.gmra.mrb[0].mxu0 %vm530_vm1, %v517_v3  ;;  %v1394_v3 = vcombine.low %v1711_v22, %v1711_v22 }
  0x1c   : > { %1447 = vmatprep.mubr.msk.bf16.mxu0 %vm1573_vm0, %v1572_v0 }
  0x1d   : > { %813 = vrot.lane.b32.xlu1 %v1392_v16, %s1577_s17 }
  0x21   : > { %811 = vrot.lane.b32.xlu1 %v1391_v17, %s1577_s17 }
  0x25   : > { %954 = vrot.lane.b32.xlu1 %v1392_v16, %s1578_s18 }
  0x29   : > { %952 = vrot.lane.b32.xlu1 %v1391_v17, %s1578_s18 }
  0x87   : > { %v670_v27 = vpop.permute.xlu1 %669 }
  0x88   : > { %v675_v30 = vsel %vm530_vm1, %v670_v27, 0 }
  0x8b   : > { %v665_v28 = vpop.permute.xlu1 %664 }
  0x8f   : > { %v814_v32 = vpop.permute.xlu1 %813 }
  0x90   : > { %v819_v34 = vsel %vm530_vm1, %v814_v32, 0 }
  0x93   : > { %v812_v33 = vpop.permute.xlu1 %811 }
  0x97   : > { %v955_v35 = vpop.permute.xlu1 %954 }
  0x98   : > { %v960_v36 = vsel %vm530_vm1, %v955_v35, 0 }
  0x9b   : > { %v953_v37 = vpop.permute.xlu1 %952 }
  0xee   : > { %v571_v8 = vpop.f32.mrb[0].mxu0 }
  0xef   : > { %v577_v9 = vmul.f32 0.35355338, %v571_v8  ;;  %v1431_v10 = vpop.f32.mrb[1].mxu0 }
  0xf0   : > { %v574_v11 = vpop.f32.mrb[2].mxu0 }
  0xf1   : > { %v1432_v12 = vpop.f32.mrb[3].mxu0  ;;  %v578_v13 = vsel %vm529_vm3, %v577_v9, -3.4028235e+38  ;;  %v1005_v9 = vld [vmem:[#allocation2 + $0x18] sm:$0xff] }
  0xf2   : > { %v580_v14 = vsel %vm530_vm1, %v578_v13, -inf }
  0xf3   : > { %581 = vmax.xlane.f32.xlu0 %v580_v14 }
 0x180   : > { %v582_v19 = vpop.xlane.xlu0 %581 }
 0x181   : > { %v1700_v20 = vmax.f32 %v1697_v18, %v582_v19 }
 0x183   : > { %v584_v21 = vsub.f32 %v1697_v18, %v1700_v20  ;;  %660 = vst.msk [vmem:[#allocation2] sm:$0xff] %vm499_vm2, %v1700_v20  ;;  %589 = vperm.xlu0 %1518, %v1700_v20  }
 0x202   : > { %v590_v24 = vpop.permute.xlu0 %589 }
 0x203   : > { %v592_v25 = vsub.f32 %v578_v13, %v590_v24 }
 0x205   : > { %v593_v26 = vmul.f32 1.442695, %v592_v25 }
 0x207   : > { %1524 = vpow2.f32 %v593_v26 }
 0x211   : > { %v1716_v29 = vpop.eup %1524 }
 0x212   : > { %v610_v31 = vpack.c.bf16 %v1716_v29, %v1716_v29  ;;  %v597_v13 = vsel %vm530_vm1, %v1716_v29, 0.0 }
 0x214   : > { %1436 = vmatmul.mubr.msk.bf16.vlgmr.msra.gmra.mrb[0].mxu1 %vm530_vm1, %v610_v31 }
 0x215   : > { %1440 = vmatpush3.bf16.xpose.msra.mxu1 %v675_v30  ;;  %1441 = vmatprep.mubr.msk.bf16.mxu1 %vm1573_vm0, %v1572_v0 }
 0x216   : > { %1451 = vmatprep.subr.bf16.mxu1 %v1572_v0 }
 0x21c   : > { %1442 = vmatmul.mubr.msk.bf16.vlgmr.msra.gmra.mrb[4].mxu1 %vm530_vm1, %v665_v28 }
 0x21d   : > { %1452 = vmatpush3.bf16.xpose.msra.mxu1 %v819_v34  ;;  %1453 = vmatprep.mubr.msk.bf16.mxu1 %vm1573_vm0, %v1572_v0 }
 0x21e   : > { %1463 = vmatprep.subr.bf16.mxu1 %v1572_v0 }
 0x224   : > { %1454 = vmatmul.mubr.msk.bf16.vlgmr.msra.gmra.mrb[8].mxu1 %vm530_vm1, %v812_v33 }
 0x225   : > { %1464 = vmatpush3.bf16.xpose.msra.mxu1 %v960_v36  ;;  %1465 = vmatprep.mubr.msk.bf16.mxu1 %vm1573_vm0, %v1572_v0 }
 0x226   : > { %1475 = vmatprep.subr.bf16.mxu1 %v1572_v0 }
 0x22c   : > { %1466 = vmatmul.mubr.msk.bf16.vlgmr.msra.gmra.mrb[12].mxu1 %vm530_vm1, %v953_v37 }
 0x22d   : > { %1479 = vmatprep.mubr.msk.bf16.mxu1 %vm1573_vm0, %v1572_v0 }
 0x2e7   : > { %v1738_v38 = vpop.f32.mrb[0].mxu1 }
 0x2e8   : > { %v1437_v39 = vpop.f32.mrb[1].mxu1 }
 0x2e9   : > { %v655_v40 = vpop.f32.mrb[2].mxu1 }
 0x2ea   : > { %v1438_v41 = vpop.f32.mrb[3].mxu1  ;;  %v585_v40 = vmul.f32 1.442695, %v584_v21 }
 0x2ef   : > { %v711_v42 = vpop.f32.mrb[4].mxu1 }
 0x2f0   : > { %v717_v43 = vmul.f32 0.35355338, %v711_v42  ;;  %v1443_v44 = vpop.f32.mrb[5].mxu1 }
 0x2f1   : > { %v714_v45 = vpop.f32.mrb[6].mxu1 }
 0x2f2   : > { %v1444_v46 = vpop.f32.mrb[7].mxu1  ;;  %v718_v47 = vsel %vm529_vm3, %v717_v43, -3.4028235e+38 }
 0x2f3   : > { %v721_v48 = vsel %vm530_vm1, %v718_v47, -inf }
 0x2f4   : > { %722 = vmax.xlane.f32.xlu1 %v721_v48 }
 0x2f7   : > { %v855_v49 = vpop.f32.mrb[8].mxu1 }
 0x2f8   : > { %v861_v50 = vmul.f32 0.35355338, %v855_v49  ;;  %v1455_v51 = vpop.f32.mrb[9].mxu1 }
 0x2f9   : > { %v858_v52 = vpop.f32.mrb[10].mxu1 }
 0x2fa   : > { %v1456_v53 = vpop.f32.mrb[11].mxu1  ;;  %v862_v54 = vsel %vm529_vm3, %v861_v50, -3.4028235e+38 }
 0x2fb   : > { %v865_v55 = vsel %vm530_vm1, %v862_v54, -inf  ;;  %v737_v53 = vld [vmem:[#allocation3 + $0x8] sm:$0xff] }
 0x2fc   : > { %866 = vmax.xlane.f32.xlu0 %v865_v55 }
 0x2ff   : > { %v996_v56 = vpop.f32.mrb[12].mxu1 }
 0x300   : > { %v1002_v57 = vmul.f32 0.35355338, %v996_v56  ;;  %v1467_v58 = vpop.f32.mrb[13].mxu1 }
 0x301   : > { %v999_v59 = vpop.f32.mrb[14].mxu1 }
 0x302   : > { %v1468_v60 = vpop.f32.mrb[15].mxu1  ;;  %v1003_v61 = vsel %vm529_vm3, %v1002_v57, -3.4028235e+38  ;;  %v881_v57 = vld [vmem:[#allocation3 + $0x10] sm:$0xff] }
 0x303   : > { %v1006_v62 = vsel %vm530_vm1, %v1003_v61, -inf }
 0x304   : > { %1007 = vmax.xlane.f32.xlu1 %v1006_v62  ;;  %v603_v62 = vld [vmem:[#allocation4] sm:$0xff] }
 0x381   : > { %v723_v1 = vpop.xlane.xlu1 %722 }
 0x382   : > { %v1755_v2 = vmax.f32 %v1752_v63, %v723_v1 }
 0x384   : > { %v725_v4 = vsub.f32 %v1752_v63, %v1755_v2  ;;  %810 = vst.msk [vmem:[#allocation2 + $0x8] sm:$0xff] %vm499_vm2, %v1755_v2  ;;  %730 = vperm.xlu1 %1519, %v1755_v2  }
 0x386   : > { %v726_v43 = vmul.f32 1.442695, %v725_v4 }
 0x388   : > { %755 = vrot.lane.b32.xlu1 %v1394_v3, %s1576_s16 }
 0x389   : > { %v867_v6 = vpop.xlane.xlu0 %866 }
 0x38a   : > { %v868_v7 = vmax.f32 %v864_v5, %v867_v6 }
 0x38c   : > { %v869_v8 = vsub.f32 %v864_v5, %v868_v7  ;;  %951 = vst.msk [vmem:[#allocation2 + $0x10] sm:$0xff] %vm499_vm2, %v868_v7  ;;  %874 = vperm.xlu0 %1518, %v868_v7  }
 0x38e   : > { %v870_v44 = vmul.f32 1.442695, %v869_v8 }
 0x391   : > { %v1008_v10 = vpop.xlane.xlu1 %1007 }
 0x392   : > { %v1009_v11 = vmax.f32 %v1005_v9, %v1008_v10 }
 0x394   : > { %v1010_v12 = vsub.f32 %v1005_v9, %v1009_v11  ;;  %1092 = vst.msk [vmem:[#allocation2 + $0x18] sm:$0xff] %vm499_vm2, %v1009_v11  ;;  %1015 = vperm.xlu1 %1519, %v1009_v11  }
 0x396   : > { %v1011_v45 = vmul.f32 1.442695, %v1010_v12 }
 0x398   : > { %896 = vrot.lane.b32.xlu1 %v1394_v3, %s1577_s17 }
 0x39c   : > { %1037 = vrot.lane.b32.xlu1 %v1394_v3, %s1578_s18 }
 0x3c0   : > { %598 = vadd.xlane.f32.xlu1 %v597_v13 }
 0x403   : > { %v731_v14 = vpop.permute.xlu1 %730 }
 0x404   : > { %v733_v15 = vsub.f32 %v718_v47, %v731_v14  ;;  %v595_v47 = vld [vmem:[#allocation3] sm:$0xff] }
 0x406   : > { %v734_v16 = vmul.f32 1.442695, %v733_v15 }
 0x407   : > { %v756_v17 = vpop.permute.xlu1 %755 }
 0x408   : > { %1526 = vpow2.f32 %v734_v16  ;;  %v761_v19 = vsel %vm614_vm4, %v756_v17, 0 }
 0x409   : > { %1446 = vmatpush3.bf16.msra.mxu0 %v761_v19 }
 0x40a   : > { %1457 = vmatprep.subr.bf16.mxu0 %v1572_v0 }
 0x40b   : > { %v875_v22 = vpop.permute.xlu0 %874 }
 0x40c   : > { %v877_v23 = vsub.f32 %v862_v54, %v875_v22 }
 0x40e   : > { %v878_v24 = vmul.f32 1.442695, %v877_v23 }
 0x410   : > { %1528 = vpow2.f32 %v878_v24 }
 0x412   : > { %v1527_v25 = vpop.eup %1526 }
 0x413   : > { %v1016_v26 = vpop.permute.xlu1 %1015  ;;  %v739_v27 = vsel %vm530_vm1, %v1527_v25, 0.0  ;;  %v751_v28 = vpack.c.bf16 %v1527_v25, %v1527_v25 }
 0x414   : > { %v1018_v29 = vsub.f32 %v1003_v61, %v1016_v26  ;;  %740 = vadd.xlane.f32.xlu0 %v739_v27  ;;  %v1022_v61 = vld [vmem:[#allocation3 + $0x18] sm:$0xff]  ;;  %v1522_v26 = vld [vmem:[%s1838_s4] sm:$0xff]   ;;  %v1523_v27 = vld [vmem:[%s1838_s4 + $0x8] sm:$0xff]  }
 0x415   : > { %1448 = vmatmul.mubr.msk.bf16.vlgmr.msra.gmra.mrb[4].mxu0 %vm530_vm1, %v751_v28  ;;  %1476 = vmatpush3.bf16.msra.mxu1 %v1522_v26 }
 0x416   : > { %v1019_v30 = vmul.f32 1.442695, %v1018_v29  ;;  %1459 = vmatprep.mubr.msk.bf16.mxu0 %vm1573_vm0, %v1572_v0  ;;  %1477 = vmatprep.subr.bf16.mxu1 %v1572_v0 }
 0x417   : > { %v897_v31 = vpop.permute.xlu1 %896 }
 0x418   : > { %1530 = vpow2.f32 %v1019_v30  ;;  %v902_v32 = vsel %vm614_vm4, %v897_v31, 0 }
 0x419   : > { %1458 = vmatpush3.bf16.msra.mxu0 %v902_v32  ;;  %1532 = vpow2.f32 %v585_v40  ;;  %1478 = vmatpush3.bf16.msra.mxu1 %v1523_v27 }
 0x41a   : > { %v1529_v33 = vpop.eup %1528  ;;  %1469 = vmatprep.subr.bf16.mxu0 %v1572_v0  ;;  %1534 = vpow2.f32 %v726_v43 }
 0x41b   : > { %v883_v34 = vsel %vm530_vm1, %v1529_v33, 0.0  ;;  %v895_v35 = vpack.c.bf16 %v1529_v33, %v1529_v33  ;;  %v1038_v36 = vpop.permute.xlu1 %1037  ;;  %1536 = vpow2.f32 %v870_v44 }
 0x41c   : > { %884 = vadd.xlane.f32.xlu0 %v883_v34  ;;  %v1043_v37 = vsel %vm614_vm4, %v1038_v36, 0  ;;  %1538 = vpow2.f32 %v1011_v45 }
 0x41d   : > { %1460 = vmatmul.mubr.msk.bf16.vlgmr.msra.gmra.mrb[8].mxu0 %vm530_vm1, %v895_v35 }
 0x41e   : > { %1470 = vmatpush3.bf16.msra.mxu0 %v1043_v37  ;;  %1471 = vmatprep.mubr.msk.bf16.mxu0 %vm1573_vm0, %v1572_v0 }
 0x422   : > { %v1531_v39 = vpop.eup %1530 }
 0x423   : > { %v1024_v41 = vsel %vm530_vm1, %v1531_v39, 0.0  ;;  %v1036_v42 = vpack.c.bf16 %v1531_v39, %v1531_v39  ;;  %v1533_v46 = vpop.eup %1532 }
 0x424   : > { %1025 = vadd.xlane.f32.xlu1 %v1024_v41  ;;  %v1535_v18 = vpop.eup %1534  ;;  %v596_v48 = vmul.f32 %v1533_v46, %v595_v47 }
 0x425   : > { %1472 = vmatmul.mubr.msk.bf16.vlgmr.msra.gmra.mrb[12].mxu0 %vm530_vm1, %v1036_v42  ;;  %v1537_v20 = vpop.eup %1536  ;;  %v738_v54 = vmul.f32 %v1535_v18, %v737_v53 }
 0x426   : > { %v1539_v21 = vpop.eup %1538  ;;  %v882_v58 = vmul.f32 %v1537_v20, %v881_v57 }
 0x427   : > { %v1023_v63 = vmul.f32 %v1539_v21, %v1022_v61 }
 0x432   : > { %606 = vperm.xlu0 %1518, %v1533_v46  }
 0x435   : > { %747 = vperm.xlu1 %1519, %v1535_v18  }
 0x436   : > { %891 = vperm.xlu0 %1518, %v1537_v20  }
 0x43a   : > { %1032 = vperm.xlu0 %1518, %v1539_v21  }
 0x44d   : > { %v599_v49 = vpop.xlane.xlu1 %598 }
 0x44e   : > { %v600_v50 = vadd.f32 %v599_v49, %v596_v48 }
 0x450   : > { %602 = vst.msk [vmem:[#allocation3] sm:$0xff] %vm499_vm2, %v600_v50  ;;  %v1400_v50 = vld [vmem:[%s1839_s5] ss:$0 sm:$0xff] }
 0x457   : > { %v1096_v51 = vld [vmem:[#allocation3] sm:$0xff] }
 0x458   : > { %1540 = vrcp.f32 %v1096_v51 }
 0x462   : > { %v1541_v52 = vpop.eup %1540 }
 0x463   : > { %1100 = vperm.xlu0 %1518, %v1541_v52   ;;  %v1203_v52 = vld [vmem:[%s480_s14] sm:$0xff] }
 0x4a1   : > { %v741_v55 = vpop.xlane.xlu0 %740 }
 0x4a2   : > { %v742_v56 = vadd.f32 %v741_v55, %v738_v54  ;;  %v1404_v55 = vld [vmem:[%s483_s19] ss:$0 sm:$0xff] }
 0x4a4   : > { %743 = vst.msk [vmem:[#allocation3 + $0x8] sm:$0xff] %vm499_vm2, %v742_v56 }
 0x4a9   : > { %v885_v59 = vpop.xlane.xlu0 %884 }
 0x4aa   : > { %v886_v60 = vadd.f32 %v885_v59, %v882_v58 }
 0x4ab   : > { %v1104_v8 = vld [vmem:[#allocation3 + $0x8] sm:$0xff] }
 0x4ac   : > { %887 = vst.msk [vmem:[#allocation3 + $0x10] sm:$0xff] %vm499_vm2, %v886_v60 }
 0x4b1   : > { %v1026_v1 = vpop.xlane.xlu1 %1025  ;;  %v607_v2 = vpop.permute.xlu0 %606 }
 0x4b2   : > { %v1027_v3 = vadd.f32 %v1026_v1, %v1023_v63  ;;  %v609_v4 = vmul.f32 %v607_v2, %v603_v62 }
 0x4b3   : > { %v1112_v5 = vld [vmem:[#allocation3 + $0x10] sm:$0xff] }
 0x4b4   : > { %1028 = vst.msk [vmem:[#allocation3 + $0x18] sm:$0xff] %vm499_vm2, %v1027_v3  ;;  %v658_v6 = vadd.f32 %v1738_v38, %v609_v4  ;;  %1542 = vrcp.f32 %v1112_v5 }
 0x4b5   : > { %1544 = vrcp.f32 %v1104_v8  ;;  %v748_v28 = vpop.permute.xlu1 %747  ;;  %v892_v33 = vpop.permute.xlu0 %891 }
 0x4b6   : > { %659 = vst.msk [vmem:[#allocation4] sm:$0xff] %vm530_vm1, %v658_v6 }
 0x4b9   : > { %v1033_v40 = vpop.permute.xlu0 %1032 }
 0x4bb   : > { %v1120_v13 = vld [vmem:[#allocation3 + $0x18] sm:$0xff] }
 0x4bc   : > { %1546 = vrcp.f32 %v1120_v13 }
 0x4bd   : > { %v744_v29 = vld [vmem:[#allocation4] sm:$0xff] }
 0x4be   : > { %v1543_v7 = vpop.eup %1542  ;;  %v750_v30 = vmul.f32 %v748_v28, %v744_v29 }
 0x4bf   : > { %1116 = vperm.xlu0 %1518, %v1543_v7   ;;  %v1545_v17 = vpop.eup %1544 }
 0x4c6   : > { %v1547_v25 = vpop.eup %1546 }
 0x4e2   : > { %v1101_v44 = vpop.permute.xlu0 %1100 }
 0x4e8   : > { %v797_v9 = vpop.f32.mrb[4].mxu0 }
 0x4e9   : > { %804 = vrot.lane.b32.xlu1 %v797_v9, %s1579_s22  ;;  %v1449_v10 = vpop.f32.mrb[5].mxu0  ;;  %s486_s22 = scalar_lea.vmem %s1841_s7, %s1848_s27 }
 0x4ea   : > { %v800_v11 = vpop.f32.mrb[6].mxu0  ;;  %v1405_v59 = vld [vmem:[%s486_s22] ss:$0 sm:$0xff] }
 0x4eb   : > { %v1450_v12 = vpop.f32.mrb[7].mxu0 }
 0x4f0   : > { %v938_v14 = vpop.f32.mrb[8].mxu0 }
 0x4f1   : > { %945 = vrot.lane.b32.xlu1 %v938_v14, %s1580_s23  ;;  %v1461_v15 = vpop.f32.mrb[9].mxu0 }
 0x4f2   : > { %v941_v16 = vpop.f32.mrb[10].mxu0 }
 0x4f3   : > { %v1462_v38 = vpop.f32.mrb[11].mxu0 }
 0x4f5   : > { %1108 = vperm.xlu1 %1519, %v1545_v17  }
 0x4f8   : > { %v1079_v19 = vpop.f32.mrb[12].mxu0 }
 0x4f9   : > { %1086 = vrot.lane.b32.xlu1 %v1079_v19, %s1581_s24  ;;  %v1473_v22 = vpop.f32.mrb[13].mxu0 }
 0x4fa   : > { %v1082_v23 = vpop.f32.mrb[14].mxu0 }
 0x4fb   : > { %v1474_v24 = vpop.f32.mrb[15].mxu0 }
 0x4fd   : > { %1124 = vperm.xlu1 %1519, %v1547_v25  }
 0x53e   : > { %v1117_v18 = vpop.permute.xlu0 %1116 }
 0x55b   : > { %v805_v31 = vpop.permute.xlu1 %804 }
 0x55c   : > { %v807_v32 = vadd.f32 %v805_v31, %v750_v30 }
 0x55e   : > { %809 = vst.msk [vmem:[#allocation4] sm:$0xff] %vm808_vm6, %v807_v32 }
 0x563   : > { %v946_v36 = vpop.permute.xlu1 %945 }
 0x565   : > { %v888_v34 = vld [vmem:[#allocation4] sm:$0xff] }
 0x566   : > { %v894_v35 = vmul.f32 %v892_v33, %v888_v34 }
 0x568   : > { %v948_v37 = vadd.f32 %v946_v36, %v894_v35 }
 0x56a   : > { %950 = vst.msk [vmem:[#allocation4] sm:$0xff] %vm949_vm7, %v948_v37 }
 0x571   : > { %v1029_v39 = vld [vmem:[#allocation4] sm:$0xff] }
 0x572   : > { %v1035_v41 = vmul.f32 %v1033_v40, %v1029_v39 }
 0x574   : > { %v1109_v0 = vpop.permute.xlu1 %1108 }
 0x575   : > { %v1128_v45 = vsel %vm530_vm1, %v1101_v44, %v1109_v0 }
 0x576   : > { %v1130_v20 = vsel %vm1129_vm9, %v1128_v45, %v1117_v18 }
 0x578   : > { %v1087_v42 = vpop.permute.xlu1 %1086 }
 0x579   : > { %v1089_v43 = vadd.f32 %v1087_v42, %v1035_v41 }
 0x57b   : > { %1091 = vst.msk [vmem:[#allocation4] sm:$0xff] %vm1090_vm8, %v1089_v43 }
 0x57c   : > { %v1125_v46 = vpop.permute.xlu1 %1124 }
 0x57d   : > { %v1132_v47 = vsel %vm1131_vm10, %v1130_v20, %v1125_v46 }
 0x582   : > { %v1133_v21 = vld [vmem:[#allocation4] sm:$0xff] }
 0x583   : > { %v1134_v48 = vmul.f32 %v1133_v21, %v1132_v47 }
 0x585   : > { %v1135_v49 = vpack.c.bf16 %v1134_v48, %v1134_v48 }
 0x587   : > { %1480 = vmatmul.mubr.msk.bf16.vlgmr.msra.gmra.mrb[16].mxu1 %vm508_vm5, %v1135_v49 }
 0x65a   : > { %v1197_v51 = vpop.f32.mrb[16].mxu1 }
 0x65b   : > { %v1198_v53 = vadd.f32 %v1400_v50, %v1197_v51  ;;  %v1481_v54 = vpop.f32.mrb[17].mxu1 }
 0x65c   : > { %v1200_v56 = vpop.f32.mrb[18].mxu1 }
 0x65d   : > { %v1204_v57 = vadd.f32 %v1203_v52, %v1198_v53  ;;  %v1482_v58 = vpop.f32.mrb[19].mxu1 }
 0x65f   : > { %v1212_v60 = vmul.f32 %v1404_v55, %v1204_v57 }
 0x661   : > { %v1220_v61 = vadd.f32 %v1405_v59, %v1212_v60 }
 0x663   : > { %1221 = vst.msk [vmem:[%s493_s25] sm:$0xff] %vm508_vm5, %v1220_v61 }
 0x664 PF: > { %s18_s29 = sadd.s32 1, %s1570_s29   ;;  %s1843_s27 = smov %s1566_s28 }
 0x665   : > { %p15_p5 = scmp.ge.s32.totalorder %s18_s29, 4   ;;  %s1844_s28 = smov %s1846_s30 }
 0x667   :  { %17 = sbr.rel (!%p15_p5) target bundleno = 2 (0x2), region = 118 }

</bundles_post_ra>
